<compile_context>
chip_gen: v7x
topology: tpu7x:2x2x1
jax: 0.10.0
libtpu: 0.0.40
codegen_flags: <defaults>
</compile_context>

<pallas_src>
import math
from functools import partial

import jax
import jax.numpy as jnp
from jax import lax
from jax.experimental import pallas as pl
from jax.experimental.pallas import tpu as pltpu


# ------------------------------ fused kernel ---------------------------------

def _fused_attention_kernel(x_q_ref, x_kv_ref, wq_ref, wk_ref, wv_ref, wo_ref,
                            ln_ref, y_ref, kout_ref,
                            q_sc, m_sc, l_sc, acc_sc, yacc_sc, *, eps):
    """Grid = (batch b, head h, kv tile kv);  b "parallel", h/kv "arbitrary".

    x_q_ref  : [1, N,  E]    tokens of batch b (query rows)
    x_kv_ref : [1, TK, E]    tokens of batch b, kv tile kv
    wq/wk/wv : [1, E,  D]    per-head projection weights (bf16, lane-aligned blocks)
    wo_ref   : [1, D,  E]    per-head output-projection weight (bf16)
    ln_ref   : [4, D]        rows = (q_gamma*scale, q_beta*scale, k_gamma, k_beta), f32
    y_ref    : [1, N,  E]    output block for batch b (accumulated over heads)
    kout_ref : [1, 1, TK, D] normalized k for (b, h, kv)  (module's 2nd output, 'b h n d')
    scratch  : q_sc [N,D], m_sc/l_sc [N,1], acc_sc [N,D], yacc_sc [N,E]   (all f32)
    """
    h = pl.program_id(1)
    kv = pl.program_id(2)
    last_h = pl.num_programs(1) - 1
    last_kv = pl.num_programs(2) - 1

    qg = ln_ref[0:1, :]          # (1, D) — attention scale already folded at setup
    qb = ln_ref[1:2, :]
    kg = ln_ref[2:3, :]
    kb = ln_ref[3:4, :]

    def layernorm(t, g, b):      # f32 elementwise math (v5e: no bf16 VPU/EUP)
        mu = jnp.mean(t, axis=-1, keepdims=True)
        var = jnp.mean(jnp.square(t - mu), axis=-1, keepdims=True)
        return (t - mu) * lax.rsqrt(var + eps) * g + b

    @pl.when(jnp.logical_and(h == 0, kv == 0))
    def _init_batch():
        yacc_sc[...] = jnp.zeros(yacc_sc.shape, jnp.float32)

    @pl.when(kv == 0)
    def _init_head():
        m_sc[...] = jnp.full(m_sc.shape, -jnp.inf, jnp.float32)
        l_sc[...] = jnp.zeros(l_sc.shape, jnp.float32)
        acc_sc[...] = jnp.zeros(acc_sc.shape, jnp.float32)
        # q projection + LayerNorm for this head, cached across the kv loop.
        xq = x_q_ref[0].astype(jnp.bfloat16)
        q = jnp.dot(xq, wq_ref[0], preferred_element_type=jnp.float32)
        q_sc[...] = layernorm(q, qg, qb)

    # k / v projection for this kv tile (bf16 MXU operands, f32 accumulation).
    xkv = x_kv_ref[0].astype(jnp.bfloat16)
    k = jnp.dot(xkv, wk_ref[0], preferred_element_type=jnp.float32)
    v = jnp.dot(xkv, wv_ref[0], preferred_element_type=jnp.float32)
    kn = layernorm(k, kg, kb)
    kout_ref[0, 0] = kn.astype(kout_ref.dtype)

    # Online-softmax update; q @ k^T contracts the last dims (no XLU transpose).
    s = lax.dot_general(q_sc[...].astype(jnp.bfloat16), kn.astype(jnp.bfloat16),
                        (((1,), (1,)), ((), ())),
                        preferred_element_type=jnp.float32)          # [N, TK]
    m_prev = m_sc[...]
    m_new = jnp.maximum(m_prev, jnp.max(s, axis=-1, keepdims=True))
    alpha = jnp.exp(m_prev - m_new)
    p = jnp.exp(s - m_new)
    l_sc[...] = alpha * l_sc[...] + jnp.sum(p, axis=-1, keepdims=True)
    acc_sc[...] = alpha * acc_sc[...] + jnp.dot(
        p.astype(jnp.bfloat16), v.astype(jnp.bfloat16),
        preferred_element_type=jnp.float32)
    m_sc[...] = m_new

    # Finalize this head: normalize and fold into the output-projection accumulator.
    @pl.when(kv == last_kv)
    def _finish_head():
        out_h = acc_sc[...] * pl.reciprocal(l_sc[...], approx=True)   # EUP slot
        yacc_sc[...] += jnp.dot(out_h.astype(jnp.bfloat16), wo_ref[0],
                                preferred_element_type=jnp.float32)

    @pl.when(jnp.logical_and(h == last_h, kv == last_kv))
    def _finish_batch():
        y_ref[0] = yacc_sc[...].astype(y_ref.dtype)


# ----------------------------- parameter setup --------------------------------

def prepare_params(w_qkv, w_out, q_gamma, q_beta, k_gamma, k_beta,
                   *, num_heads, head_dim, embed_dim):
    """One-time reorg of PyTorch-layout weights into per-head, MXU-ready blocks."""
    H, D, E = num_heads, head_dim, embed_dim
    scale = 1.0 / math.sqrt(D)
    # proj_qkv.weight: [3HD, E]; feature layout '(three h d)'.
    w3 = w_qkv.T.reshape(E, 3, H, D).transpose(1, 2, 0, 3)      # [3, H, E, D]
    # proj_out.weight: [E, HD]; input layout '(h d)'.
    wo = w_out.T.reshape(H, D, E)
    return {
        "wq": w3[0].astype(jnp.bfloat16),                        # [H, E, D]
        "wk": w3[1].astype(jnp.bfloat16),
        "wv": w3[2].astype(jnp.bfloat16),
        "wo": wo.astype(jnp.bfloat16),                           # [H, D, E]
        # Packed LN params; attention scale folded into q affine at setup time.
        "ln": jnp.stack([q_gamma * scale, q_beta * scale, k_gamma, k_beta],
                        axis=0).astype(jnp.float32),             # [4, D]
    }


# ------------------------------ module wrapper --------------------------------

def attention_forward(x, params, *, num_heads, head_dim, eps=1e-5):
    """Reproduces Attention.forward(x) -> (proj_out(out), k_normed)."""
    B, N, E = x.shape
    H, D = num_heads, head_dim
    tk = N if N <= 128 else 128
    assert N % tk == 0, "sequence length must be divisible by the kv tile"
    nkv = N // tk

    kernel = partial(_fused_attention_kernel, eps=eps)

    itemsize = jnp.dtype(x.dtype).itemsize
    flops = int(2 * B * N * E * 3 * H * D + 4 * B * H * N * N * D
                + 2 * B * N * H * D * E)
    bytes_accessed = int(
        2 * B * N * E * itemsize                                  # x (read twice)
        + sum(params[k].size * jnp.dtype(params[k].dtype).itemsize
              for k in ("wq", "wk", "wv", "wo", "ln"))
        + B * N * E * itemsize                                    # y
        + B * H * N * D * itemsize)                               # k_normed

    y, k_normed = pl.pallas_call(
        kernel,
        grid=(B, H, nkv),
        out_shape=(
            jax.ShapeDtypeStruct((B, N, E), x.dtype),
            jax.ShapeDtypeStruct((B, H, N, D), x.dtype),
        ),
        in_specs=[
            pl.BlockSpec((1, N, E), lambda b, h, kv: (b, 0, 0)),    # x -> q rows
            pl.BlockSpec((1, tk, E), lambda b, h, kv: (b, kv, 0)),  # x -> kv tile
            pl.BlockSpec((1, E, D), lambda b, h, kv: (h, 0, 0)),    # wq[h]
            pl.BlockSpec((1, E, D), lambda b, h, kv: (h, 0, 0)),    # wk[h]
            pl.BlockSpec((1, E, D), lambda b, h, kv: (h, 0, 0)),    # wv[h]
            pl.BlockSpec((1, D, E), lambda b, h, kv: (h, 0, 0)),    # wo[h]
            pl.BlockSpec((4, D), lambda b, h, kv: (0, 0)),          # packed LN params
        ],
        out_specs=(
            pl.BlockSpec((1, N, E), lambda b, h, kv: (b, 0, 0)),        # y (resident acc)
            pl.BlockSpec((1, 1, tk, D), lambda b, h, kv: (b, h, kv, 0)),  # k_normed
        ),
        scratch_shapes=[
            pltpu.VMEM((N, D), jnp.float32),   # q (normed, pre-scaled)
            pltpu.VMEM((N, 1), jnp.float32),   # m (running max)
            pltpu.VMEM((N, 1), jnp.float32),   # l (running denom)
            pltpu.VMEM((N, D), jnp.float32),   # attn @ v accumulator
            pltpu.VMEM((N, E), jnp.float32),   # output-projection accumulator
        ],
        compiler_params=pltpu.CompilerParams(
            dimension_semantics=("parallel", "arbitrary", "arbitrary"),
            vmem_limit_bytes=48 * 1024 * 1024,
        ),
        cost_estimate=pl.CostEstimate(
            flops=flops, transcendentals=int(B * H * N * N),
            bytes_accessed=bytes_accessed),
    )(x, x, params["wq"], params["wk"], params["wv"], params["wo"], params["ln"])

    return y, k_normed


# ------------------------------ pure-JAX reference ----------------------------

def reference_forward(x, w_qkv, w_out, q_gamma, q_beta, k_gamma, k_beta,
                      *, num_heads, head_dim, eps=1e-5):
    """f32 / HIGHEST-precision reference matching the PyTorch module exactly."""
    B, N, E = x.shape
    H, D = num_heads, head_dim
    hi = lax.Precision.HIGHEST
    qkv = jnp.einsum("bne,fe->bnf", x, w_qkv, precision=hi)            # [B, N, 3HD]
    qkv = qkv.reshape(B, N, 3, H, D).transpose(2, 0, 3, 1, 4)          # [3, B, H, N, D]
    q, k, v = qkv[0], qkv[1], qkv[2]

    def ln(t, g, b):
        mu = t.mean(-1, keepdims=True)
        var = ((t - mu) ** 2).mean(-1, keepdims=True)
        return (t - mu) / jnp.sqrt(var + eps) * g + b

    q = ln(q, q_gamma, q_beta)
    k = ln(k, k_gamma, k_beta)
    s = jnp.einsum("bhnd,bhmd->bhnm", q, k, precision=hi) / math.sqrt(D)
    p = jax.nn.softmax(s, axis=-1)
    o = jnp.einsum("bhnm,bhmd->bhnd", p, v, precision=hi)
    o = o.transpose(0, 2, 1, 3).reshape(B, N, H * D)
    y = jnp.einsum("bnf,ef->bne", o, w_out, precision=hi)
    return y, k


# ----------------------------------- main --------------------------------------

if __name__ == "__main__":
    # AttentionConfig(embed_dim=32, head_dim=32, num_attention_heads=2,
    #                 should_use_qk_norm=True, qk_norm_mode='layernorm')
    B, N = 2, 8
    E, H, D = 32, 2, 32

    key = jax.random.PRNGKey(0)
    kx, kqkv, kow, kg1, kg2, kb1, kb2 = jax.random.split(key, 7)

    x = jax.random.normal(kx, (B, N, E), dtype=jnp.float32)

    # PyTorch layouts: proj_qkv.weight [3HD, E], proj_out.weight [E, HD].
    w_qkv = 0.05 * jax.random.normal(kqkv, (3 * H * D, E), dtype=jnp.float32)
    w_out = 0.05 * jax.random.normal(kow, (E, H * D), dtype=jnp.float32)
    # nn.LayerNorm(head_dim) weights/biases (perturbed for a nontrivial test).
    q_gamma = 1.0 + 0.1 * jax.random.normal(kg1, (D,), dtype=jnp.float32)
    q_beta = 0.1 * jax.random.normal(kb1, (D,), dtype=jnp.float32)
    k_gamma = 1.0 + 0.1 * jax.random.normal(kg2, (D,), dtype=jnp.float32)
    k_beta = 0.1 * jax.random.normal(kb2, (D,), dtype=jnp.float32)

    params = prepare_params(w_qkv, w_out, q_gamma, q_beta, k_gamma, k_beta,
                            num_heads=H, head_dim=D, embed_dim=E)

    y, k_out = attention_forward(x, params, num_heads=H, head_dim=D)
    jax.block_until_ready((y, k_out))

    y_ref, k_ref = reference_forward(x, w_qkv, w_out, q_gamma, q_beta,
                                     k_gamma, k_beta, num_heads=H, head_dim=D)

    assert y.shape == (B, N, E) and k_out.shape == (B, H, N, D)
    # Kernel uses bf16 MXU operands (f32 accumulation); tolerances sized accordingly.
    assert jnp.allclose(y, y_ref, atol=3e-2, rtol=3e-2), (
        "output mismatch: max abs err = %f" % float(jnp.max(jnp.abs(y - y_ref))))
    assert jnp.allclose(k_out, k_ref, atol=3e-2, rtol=3e-2), (
        "k mismatch: max abs err = %f" % float(jnp.max(jnp.abs(k_out - k_ref))))

    print("KERNEL_OK")
</pallas_src>

<mosaic_0001>
module attributes {stable_mosaic.version = 11 : i64} {
  func.func @_fused_attention_kernel(%arg0: i32, %arg1: i32, %arg2: i32, %arg3: memref<1x8x32xf32, #tpu.memory_space<vmem>>, %arg4: memref<1x8x32xf32, #tpu.memory_space<vmem>>, %arg5: memref<1x32x32xbf16, #tpu.memory_space<vmem>>, %arg6: memref<1x32x32xbf16, #tpu.memory_space<vmem>>, %arg7: memref<1x32x32xbf16, #tpu.memory_space<vmem>>, %arg8: memref<1x32x32xbf16, #tpu.memory_space<vmem>>, %arg9: memref<4x32xf32, #tpu.memory_space<vmem>>, %arg10: memref<1x8x32xf32, #tpu.memory_space<vmem>>, %arg11: memref<1x1x8x32xf32, #tpu.memory_space<vmem>>, %arg12: memref<8x32xf32, #tpu.memory_space<vmem>>, %arg13: memref<8x1xf32, #tpu.memory_space<vmem>>, %arg14: memref<8x1xf32, #tpu.memory_space<vmem>>, %arg15: memref<8x32xf32, #tpu.memory_space<vmem>>, %arg16: memref<8x32xf32, #tpu.memory_space<vmem>>) attributes {dimension_semantics = [#tpu.dimension_semantics<parallel>, #tpu.dimension_semantics<arbitrary>, #tpu.dimension_semantics<arbitrary>], iteration_bounds = array<i64: 2, 2, 1>, scalar_prefetch = 0 : i64, scratch_operands = 5 : i64, tpu.core_type = #tpu.core_type<tc>, window_params = [{transform_indices = @transform_0, window_bounds = array<i64: 1, 8, 32>}, {transform_indices = @transform_1, window_bounds = array<i64: 1, 8, 32>}, {transform_indices = @transform_2, window_bounds = array<i64: 1, 32, 32>}, {transform_indices = @transform_3, window_bounds = array<i64: 1, 32, 32>}, {transform_indices = @transform_4, window_bounds = array<i64: 1, 32, 32>}, {transform_indices = @transform_5, window_bounds = array<i64: 1, 32, 32>}, {pipeline_mode = #tpu.pipeline_mode<synchronous>, transform_indices = @transform_6, window_bounds = array<i64: 4, 32>}, {transform_indices = @transform_7, window_bounds = array<i64: 1, 8, 32>}, {transform_indices = @transform_8, window_bounds = array<i64: 1, 1, 8, 32>}]} {
    %c0 = arith.constant 0 : index
    %c0_0 = arith.constant 0 : index
    %0 = vector.load %arg9[%c0, %c0_0] : memref<4x32xf32, #tpu.memory_space<vmem>>, vector<1x32xf32>
    %c1 = arith.constant 1 : index
    %c0_1 = arith.constant 0 : index
    %1 = vector.load %arg9[%c1, %c0_1] : memref<4x32xf32, #tpu.memory_space<vmem>>, vector<1x32xf32>
    %c2 = arith.constant 2 : index
    %c0_2 = arith.constant 0 : index
    %2 = vector.load %arg9[%c2, %c0_2] : memref<4x32xf32, #tpu.memory_space<vmem>>, vector<1x32xf32>
    %c3 = arith.constant 3 : index
    %c0_3 = arith.constant 0 : index
    %3 = vector.load %arg9[%c3, %c0_3] : memref<4x32xf32, #tpu.memory_space<vmem>>, vector<1x32xf32>
    %c0_i32 = arith.constant 0 : i32
    %4 = arith.cmpi eq, %arg1, %c0_i32 : i32
    %c0_i32_4 = arith.constant 0 : i32
    %5 = arith.cmpi eq, %arg2, %c0_i32_4 : i32
    %6 = arith.andi %4, %5 : i1
    %7 = arith.extui %6 : i1 to i32
    %c0_i32_5 = arith.constant 0 : i32
    %8 = arith.cmpi ne, %7, %c0_i32_5 : i32
    scf.if %8 {
      %cst_49 = arith.constant 0.000000e+00 : f32
      %82 = vector.broadcast %cst_49 : f32 to vector<8x32xf32>
      %c0_50 = arith.constant 0 : index
      %c0_51 = arith.constant 0 : index
      %83 = vector.load %arg16[%c0_50, %c0_51] : memref<8x32xf32, #tpu.memory_space<vmem>>, vector<8x32xf32>
      tpu.vector_store %arg16[%c0_50, %c0_51], %82 {strides = array<i32>} : memref<8x32xf32, #tpu.memory_space<vmem>>, vector<8x32xf32>,
    } else {
    }
    %c0_i32_6 = arith.constant 0 : i32
    %9 = arith.cmpi eq, %arg2, %c0_i32_6 : i32
    %10 = arith.extui %9 : i1 to i32
    %c0_i32_7 = arith.constant 0 : i32
    %11 = arith.cmpi ne, %10, %c0_i32_7 : i32
    scf.if %11 {
      %cst_49 = arith.constant 0xFF800000 : f32
      %82 = vector.broadcast %cst_49 : f32 to vector<8x1xf32>
      %c0_50 = arith.constant 0 : index
      %c0_51 = arith.constant 0 : index
      %83 = vector.load %arg13[%c0_50, %c0_51] : memref<8x1xf32, #tpu.memory_space<vmem>>, vector<8x1xf32>
      tpu.vector_store %arg13[%c0_50, %c0_51], %82 {strides = array<i32>} : memref<8x1xf32, #tpu.memory_space<vmem>>, vector<8x1xf32>,
      %cst_52 = arith.constant 0.000000e+00 : f32
      %84 = vector.broadcast %cst_52 : f32 to vector<8x1xf32>
      %c0_53 = arith.constant 0 : index
      %c0_54 = arith.constant 0 : index
      %85 = vector.load %arg14[%c0_53, %c0_54] : memref<8x1xf32, #tpu.memory_space<vmem>>, vector<8x1xf32>
      tpu.vector_store %arg14[%c0_53, %c0_54], %84 {strides = array<i32>} : memref<8x1xf32, #tpu.memory_space<vmem>>, vector<8x1xf32>,
      %cst_55 = arith.constant 0.000000e+00 : f32
      %86 = vector.broadcast %cst_55 : f32 to vector<8x32xf32>
      %c0_56 = arith.constant 0 : index
      %c0_57 = arith.constant 0 : index
      %87 = vector.load %arg15[%c0_56, %c0_57] : memref<8x32xf32, #tpu.memory_space<vmem>>, vector<8x32xf32>
      tpu.vector_store %arg15[%c0_56, %c0_57], %86 {strides = array<i32>} : memref<8x32xf32, #tpu.memory_space<vmem>>, vector<8x32xf32>,
      %c0_58 = arith.constant 0 : index
      %c0_59 = arith.constant 0 : index
      %c0_60 = arith.constant 0 : index
      %88 = vector.load %arg3[%c0_58, %c0_59, %c0_60] : memref<1x8x32xf32, #tpu.memory_space<vmem>>, vector<1x8x32xf32>
      %89 = vector.shape_cast %88 : vector<1x8x32xf32> to vector<8x32xf32>
      %90 = arith.truncf %89 : vector<8x32xf32> to vector<8x32xbf16>
      %c0_61 = arith.constant 0 : index
      %c0_62 = arith.constant 0 : index
      %c0_63 = arith.constant 0 : index
      %91 = vector.load %arg5[%c0_61, %c0_62, %c0_63] : memref<1x32x32xbf16, #tpu.memory_space<vmem>>, vector<1x32x32xbf16>
      %92 = vector.shape_cast %91 : vector<1x32x32xbf16> to vector<32x32xbf16>
      %cst_64 = arith.constant dense<0.000000e+00> : vector<8x32xf32>
      %93 = tpu.matmul %90, %92, %cst_64 {dimension_numbers = #tpu.dot_dimension_numbers<[1], [0], [0], [1], [0, 0, 1, 1], [], []>} : vector<8x32xbf16>, vector<32x32xbf16>, vector<8x32xf32> -> vector<8x32xf32>
      %cst_65 = arith.constant dense<0.000000e+00> : vector<8xf32>
      %94 = vector.multi_reduction <add>, %93, %cst_65 [1] : vector<8x32xf32> to vector<8xf32>
      %95 = vector.shape_cast %94 : vector<8xf32> to vector<8x1xf32>
      %cst_66 = arith.constant 3.200000e+01 : f32
      %96 = vector.broadcast %cst_66 : f32 to vector<8x1xf32>
      %97 = arith.divf %95, %96 : vector<8x1xf32>
      %98 = vector.broadcast %97 : vector<8x1xf32> to vector<8x32xf32>
      %99 = arith.subf %93, %98 : vector<8x32xf32>
      %100 = arith.mulf %99, %99 : vector<8x32xf32>
      %cst_67 = arith.constant dense<0.000000e+00> : vector<8xf32>
      %101 = vector.multi_reduction <add>, %100, %cst_67 [1] : vector<8x32xf32> to vector<8xf32>
      %102 = vector.shape_cast %101 : vector<8xf32> to vector<8x1xf32>
      %cst_68 = arith.constant 3.200000e+01 : f32
      %103 = vector.broadcast %cst_68 : f32 to vector<8x1xf32>
      %104 = arith.divf %102, %103 : vector<8x1xf32>
      %105 = vector.broadcast %97 : vector<8x1xf32> to vector<8x32xf32>
      %106 = arith.subf %93, %105 : vector<8x32xf32>
      %cst_69 = arith.constant 9.99999974E-6 : f32
      %107 = vector.broadcast %cst_69 : f32 to vector<8x1xf32>
      %108 = arith.addf %104, %107 : vector<8x1xf32>
      %109 = math.rsqrt %108 : vector<8x1xf32>
      %110 = vector.broadcast %109 : vector<8x1xf32> to vector<8x32xf32>
      %111 = arith.mulf %106, %110 : vector<8x32xf32>
      %112 = vector.broadcast %0 : vector<1x32xf32> to vector<8x32xf32>
      %113 = arith.mulf %111, %112 : vector<8x32xf32>
      %114 = vector.broadcast %1 : vector<1x32xf32> to vector<8x32xf32>
      %115 = arith.addf %113, %114 : vector<8x32xf32>
      %c0_70 = arith.constant 0 : index
      %c0_71 = arith.constant 0 : index
      %116 = vector.load %arg12[%c0_70, %c0_71] : memref<8x32xf32, #tpu.memory_space<vmem>>, vector<8x32xf32>
      tpu.vector_store %arg12[%c0_70, %c0_71], %115 {strides = array<i32>} : memref<8x32xf32, #tpu.memory_space<vmem>>, vector<8x32xf32>,
    } else {
    }
    %c0_8 = arith.constant 0 : index
    %c0_9 = arith.constant 0 : index
    %c0_10 = arith.constant 0 : index
    %12 = vector.load %arg4[%c0_8, %c0_9, %c0_10] : memref<1x8x32xf32, #tpu.memory_space<vmem>>, vector<1x8x32xf32>
    %13 = vector.shape_cast %12 : vector<1x8x32xf32> to vector<8x32xf32>
    %14 = arith.truncf %13 : vector<8x32xf32> to vector<8x32xbf16>
    %c0_11 = arith.constant 0 : index
    %c0_12 = arith.constant 0 : index
    %c0_13 = arith.constant 0 : index
    %15 = vector.load %arg6[%c0_11, %c0_12, %c0_13] : memref<1x32x32xbf16, #tpu.memory_space<vmem>>, vector<1x32x32xbf16>
    %16 = vector.shape_cast %15 : vector<1x32x32xbf16> to vector<32x32xbf16>
    %cst = arith.constant dense<0.000000e+00> : vector<8x32xf32>
    %17 = tpu.matmul %14, %16, %cst {dimension_numbers = #tpu.dot_dimension_numbers<[1], [0], [0], [1], [0, 0, 1, 1], [], []>} : vector<8x32xbf16>, vector<32x32xbf16>, vector<8x32xf32> -> vector<8x32xf32>
    %c0_14 = arith.constant 0 : index
    %c0_15 = arith.constant 0 : index
    %c0_16 = arith.constant 0 : index
    %18 = vector.load %arg7[%c0_14, %c0_15, %c0_16] : memref<1x32x32xbf16, #tpu.memory_space<vmem>>, vector<1x32x32xbf16>
    %19 = vector.shape_cast %18 : vector<1x32x32xbf16> to vector<32x32xbf16>
    %cst_17 = arith.constant dense<0.000000e+00> : vector<8x32xf32>
    %20 = tpu.matmul %14, %19, %cst_17 {dimension_numbers = #tpu.dot_dimension_numbers<[1], [0], [0], [1], [0, 0, 1, 1], [], []>} : vector<8x32xbf16>, vector<32x32xbf16>, vector<8x32xf32> -> vector<8x32xf32>
    %cst_18 = arith.constant dense<0.000000e+00> : vector<8xf32>
    %21 = vector.multi_reduction <add>, %17, %cst_18 [1] : vector<8x32xf32> to vector<8xf32>
    %22 = vector.shape_cast %21 : vector<8xf32> to vector<8x1xf32>
    %cst_19 = arith.constant 3.200000e+01 : f32
    %23 = vector.broadcast %cst_19 : f32 to vector<8x1xf32>
    %24 = arith.divf %22, %23 : vector<8x1xf32>
    %25 = vector.broadcast %24 : vector<8x1xf32> to vector<8x32xf32>
    %26 = arith.subf %17, %25 : vector<8x32xf32>
    %27 = arith.mulf %26, %26 : vector<8x32xf32>
    %cst_20 = arith.constant dense<0.000000e+00> : vector<8xf32>
    %28 = vector.multi_reduction <add>, %27, %cst_20 [1] : vector<8x32xf32> to vector<8xf32>
    %29 = vector.shape_cast %28 : vector<8xf32> to vector<8x1xf32>
    %cst_21 = arith.constant 3.200000e+01 : f32
    %30 = vector.broadcast %cst_21 : f32 to vector<8x1xf32>
    %31 = arith.divf %29, %30 : vector<8x1xf32>
    %32 = vector.broadcast %24 : vector<8x1xf32> to vector<8x32xf32>
    %33 = arith.subf %17, %32 : vector<8x32xf32>
    %cst_22 = arith.constant 9.99999974E-6 : f32
    %34 = vector.broadcast %cst_22 : f32 to vector<8x1xf32>
    %35 = arith.addf %31, %34 : vector<8x1xf32>
    %36 = math.rsqrt %35 : vector<8x1xf32>
    %37 = vector.broadcast %36 : vector<8x1xf32> to vector<8x32xf32>
    %38 = arith.mulf %33, %37 : vector<8x32xf32>
    %39 = vector.broadcast %2 : vector<1x32xf32> to vector<8x32xf32>
    %40 = arith.mulf %38, %39 : vector<8x32xf32>
    %41 = vector.broadcast %3 : vector<1x32xf32> to vector<8x32xf32>
    %42 = arith.addf %40, %41 : vector<8x32xf32>
    %c0_23 = arith.constant 0 : index
    %c0_24 = arith.constant 0 : index
    %c0_25 = arith.constant 0 : index
    %c0_26 = arith.constant 0 : index
    %43 = vector.load %arg11[%c0_23, %c0_24, %c0_25, %c0_26] : memref<1x1x8x32xf32, #tpu.memory_space<vmem>>, vector<1x1x8x32xf32>
    %44 = vector.shape_cast %43 : vector<1x1x8x32xf32> to vector<8x32xf32>
    %45 = vector.shape_cast %42 : vector<8x32xf32> to vector<1x1x8x32xf32>
    tpu.vector_store %arg11[%c0_23, %c0_24, %c0_25, %c0_26], %45 {strides = array<i32>} : memref<1x1x8x32xf32, #tpu.memory_space<vmem>>, vector<1x1x8x32xf32>,
    %c0_27 = arith.constant 0 : index
    %c0_28 = arith.constant 0 : index
    %46 = vector.load %arg12[%c0_27, %c0_28] : memref<8x32xf32, #tpu.memory_space<vmem>>, vector<8x32xf32>
    %47 = arith.truncf %46 : vector<8x32xf32> to vector<8x32xbf16>
    %48 = arith.truncf %42 : vector<8x32xf32> to vector<8x32xbf16>
    %cst_29 = arith.constant dense<0.000000e+00> : vector<8x8xf32>
    %49 = tpu.matmul %47, %48, %cst_29 {dimension_numbers = #tpu.dot_dimension_numbers<[1], [1], [0], [0], [0, 0, 1, 0], [], []>} : vector<8x32xbf16>, vector<8x32xbf16>, vector<8x8xf32> -> vector<8x8xf32>
    %c0_30 = arith.constant 0 : index
    %c0_31 = arith.constant 0 : index
    %50 = vector.load %arg13[%c0_30, %c0_31] : memref<8x1xf32, #tpu.memory_space<vmem>>, vector<8x1xf32>
    %cst_32 = arith.constant dense<0xFF800000> : vector<8xf32>
    %51 = vector.multi_reduction <maximumf>, %49, %cst_32 [1] : vector<8x8xf32> to vector<8xf32>
    %52 = vector.shape_cast %51 : vector<8xf32> to vector<8x1xf32>
    %53 = arith.maximumf %50, %52 : vector<8x1xf32>
    %54 = arith.subf %50, %53 : vector<8x1xf32>
    %55 = math.exp %54 : vector<8x1xf32>
    %56 = vector.broadcast %53 : vector<8x1xf32> to vector<8x8xf32>
    %57 = arith.subf %49, %56 : vector<8x8xf32>
    %58 = math.exp %57 : vector<8x8xf32>
    %c0_33 = arith.constant 0 : index
    %c0_34 = arith.constant 0 : index
    %59 = vector.load %arg14[%c0_33, %c0_34] : memref<8x1xf32, #tpu.memory_space<vmem>>, vector<8x1xf32>
    %60 = arith.mulf %55, %59 : vector<8x1xf32>
    %cst_35 = arith.constant dense<0.000000e+00> : vector<8xf32>
    %61 = vector.multi_reduction <add>, %58, %cst_35 [1] : vector<8x8xf32> to vector<8xf32>
    %62 = vector.shape_cast %61 : vector<8xf32> to vector<8x1xf32>
    %63 = arith.addf %60, %62 : vector<8x1xf32>
    %c0_36 = arith.constant 0 : index
    %c0_37 = arith.constant 0 : index
    %64 = vector.load %arg14[%c0_36, %c0_37] : memref<8x1xf32, #tpu.memory_space<vmem>>, vector<8x1xf32>
    tpu.vector_store %arg14[%c0_36, %c0_37], %63 {strides = array<i32>} : memref<8x1xf32, #tpu.memory_space<vmem>>, vector<8x1xf32>,
    %c0_38 = arith.constant 0 : index
    %c0_39 = arith.constant 0 : index
    %65 = vector.load %arg15[%c0_38, %c0_39] : memref<8x32xf32, #tpu.memory_space<vmem>>, vector<8x32xf32>
    %66 = vector.broadcast %55 : vector<8x1xf32> to vector<8x32xf32>
    %67 = arith.mulf %66, %65 : vector<8x32xf32>
    %68 = arith.truncf %58 : vector<8x8xf32> to vector<8x8xbf16>
    %69 = arith.truncf %20 : vector<8x32xf32> to vector<8x32xbf16>
    %cst_40 = arith.constant dense<0.000000e+00> : vector<8x32xf32>
    %70 = tpu.matmul %68, %69, %cst_40 {dimension_numbers = #tpu.dot_dimension_numbers<[1], [0], [0], [1], [0, 0, 1, 1], [], []>} : vector<8x8xbf16>, vector<8x32xbf16>, vector<8x32xf32> -> vector<8x32xf32>
    %71 = arith.addf %67, %70 : vector<8x32xf32>
    %c0_41 = arith.constant 0 : index
    %c0_42 = arith.constant 0 : index
    %72 = vector.load %arg15[%c0_41, %c0_42] : memref<8x32xf32, #tpu.memory_space<vmem>>, vector<8x32xf32>
    tpu.vector_store %arg15[%c0_41, %c0_42], %71 {strides = array<i32>} : memref<8x32xf32, #tpu.memory_space<vmem>>, vector<8x32xf32>,
    %c0_43 = arith.constant 0 : index
    %c0_44 = arith.constant 0 : index
    %73 = vector.load %arg13[%c0_43, %c0_44] : memref<8x1xf32, #tpu.memory_space<vmem>>, vector<8x1xf32>
    tpu.vector_store %arg13[%c0_43, %c0_44], %53 {strides = array<i32>} : memref<8x1xf32, #tpu.memory_space<vmem>>, vector<8x1xf32>,
    %c0_i32_45 = arith.constant 0 : i32
    %74 = arith.cmpi eq, %arg2, %c0_i32_45 : i32
    %75 = arith.extui %74 : i1 to i32
    %c0_i32_46 = arith.constant 0 : i32
    %76 = arith.cmpi ne, %75, %c0_i32_46 : i32
    scf.if %76 {
      %c0_49 = arith.constant 0 : index
      %c0_50 = arith.constant 0 : index
      %82 = vector.load %arg15[%c0_49, %c0_50] : memref<8x32xf32, #tpu.memory_space<vmem>>, vector<8x32xf32>
      %c0_51 = arith.constant 0 : index
      %c0_52 = arith.constant 0 : index
      %83 = vector.load %arg14[%c0_51, %c0_52] : memref<8x1xf32, #tpu.memory_space<vmem>>, vector<8x1xf32>
      %84 = tpu.reciprocal %83 {approx = true} : vector<8x1xf32> -> vector<8x1xf32>
      %85 = vector.broadcast %84 : vector<8x1xf32> to vector<8x32xf32>
      %86 = arith.mulf %82, %85 : vector<8x32xf32>
      %c0_53 = arith.constant 0 : index
      %c0_54 = arith.constant 0 : index
      %87 = vector.load %arg16[%c0_53, %c0_54] : memref<8x32xf32, #tpu.memory_space<vmem>>, vector<8x32xf32>
      %88 = arith.truncf %86 : vector<8x32xf32> to vector<8x32xbf16>
      %c0_55 = arith.constant 0 : index
      %c0_56 = arith.constant 0 : index
      %c0_57 = arith.constant 0 : index
      %89 = vector.load %arg8[%c0_55, %c0_56, %c0_57] : memref<1x32x32xbf16, #tpu.memory_space<vmem>>, vector<1x32x32xbf16>
      %90 = vector.shape_cast %89 : vector<1x32x32xbf16> to vector<32x32xbf16>
      %cst_58 = arith.constant dense<0.000000e+00> : vector<8x32xf32>
      %91 = tpu.matmul %88, %90, %cst_58 {dimension_numbers = #tpu.dot_dimension_numbers<[1], [0], [0], [1], [0, 0, 1, 1], [], []>} : vector<8x32xbf16>, vector<32x32xbf16>, vector<8x32xf32> -> vector<8x32xf32>
      %92 = arith.addf %87, %91 : vector<8x32xf32>
      %c0_59 = arith.constant 0 : index
      %c0_60 = arith.constant 0 : index
      %93 = vector.load %arg16[%c0_59, %c0_60] : memref<8x32xf32, #tpu.memory_space<vmem>>, vector<8x32xf32>
      tpu.vector_store %arg16[%c0_59, %c0_60], %92 {strides = array<i32>} : memref<8x32xf32, #tpu.memory_space<vmem>>, vector<8x32xf32>,
    } else {
    }
    %c1_i32 = arith.constant 1 : i32
    %77 = arith.cmpi eq, %arg1, %c1_i32 : i32
    %c0_i32_47 = arith.constant 0 : i32
    %78 = arith.cmpi eq, %arg2, %c0_i32_47 : i32
    %79 = arith.andi %77, %78 : i1
    %80 = arith.extui %79 : i1 to i32
    %c0_i32_48 = arith.constant 0 : i32
    %81 = arith.cmpi ne, %80, %c0_i32_48 : i32
    scf.if %81 {
      %c0_49 = arith.constant 0 : index
      %c0_50 = arith.constant 0 : index
      %82 = vector.load %arg16[%c0_49, %c0_50] : memref<8x32xf32, #tpu.memory_space<vmem>>, vector<8x32xf32>
      %c0_51 = arith.constant 0 : index
      %c0_52 = arith.constant 0 : index
      %c0_53 = arith.constant 0 : index
      %83 = vector.load %arg10[%c0_51, %c0_52, %c0_53] : memref<1x8x32xf32, #tpu.memory_space<vmem>>, vector<1x8x32xf32>
      %84 = vector.shape_cast %83 : vector<1x8x32xf32> to vector<8x32xf32>
      %85 = vector.shape_cast %82 : vector<8x32xf32> to vector<1x8x32xf32>
      tpu.vector_store %arg10[%c0_51, %c0_52, %c0_53], %85 {strides = array<i32>} : memref<1x8x32xf32, #tpu.memory_space<vmem>>, vector<1x8x32xf32>,
    } else {
    }
    return
  }
  func.func @transform_0(%arg0: i32, %arg1: i32, %arg2: i32) -> (i32, i32, i32) {
    %c0_i32 = arith.constant 0 : i32
    %c0_i32_0 = arith.constant 0 : i32
    %c0_i32_1 = arith.constant 0 : i32
    return %arg0, %c0_i32, %c0_i32_0 : i32, i32, i32
  }
  func.func @transform_1(%arg0: i32, %arg1: i32, %arg2: i32) -> (i32, i32, i32) {
    %c0_i32 = arith.constant 0 : i32
    %c0_i32_0 = arith.constant 0 : i32
    return %arg0, %arg2, %c0_i32 : i32, i32, i32
  }
  func.func @transform_2(%arg0: i32, %arg1: i32, %arg2: i32) -> (i32, i32, i32) {
    %c0_i32 = arith.constant 0 : i32
    %c0_i32_0 = arith.constant 0 : i32
    %c0_i32_1 = arith.constant 0 : i32
    return %arg1, %c0_i32, %c0_i32_0 : i32, i32, i32
  }
  func.func @transform_3(%arg0: i32, %arg1: i32, %arg2: i32) -> (i32, i32, i32) {
    %c0_i32 = arith.constant 0 : i32
    %c0_i32_0 = arith.constant 0 : i32
    %c0_i32_1 = arith.constant 0 : i32
    return %arg1, %c0_i32, %c0_i32_0 : i32, i32, i32
  }
  func.func @transform_4(%arg0: i32, %arg1: i32, %arg2: i32) -> (i32, i32, i32) {
    %c0_i32 = arith.constant 0 : i32
    %c0_i32_0 = arith.constant 0 : i32
    %c0_i32_1 = arith.constant 0 : i32
    return %arg1, %c0_i32, %c0_i32_0 : i32, i32, i32
  }
  func.func @transform_5(%arg0: i32, %arg1: i32, %arg2: i32) -> (i32, i32, i32) {
    %c0_i32 = arith.constant 0 : i32
    %c0_i32_0 = arith.constant 0 : i32
    %c0_i32_1 = arith.constant 0 : i32
    return %arg1, %c0_i32, %c0_i32_0 : i32, i32, i32
  }
  func.func @transform_6(%arg0: i32, %arg1: i32, %arg2: i32) -> (i32, i32) {
    %c0_i32 = arith.constant 0 : i32
    %c0_i32_0 = arith.constant 0 : i32
    %c0_i32_1 = arith.constant 0 : i32
    return %c0_i32, %c0_i32_0 : i32, i32
  }
  func.func @transform_7(%arg0: i32, %arg1: i32, %arg2: i32) -> (i32, i32, i32) {
    %c0_i32 = arith.constant 0 : i32
    %c0_i32_0 = arith.constant 0 : i32
    %c0_i32_1 = arith.constant 0 : i32
    return %arg0, %c0_i32, %c0_i32_0 : i32, i32, i32
  }
  func.func @transform_8(%arg0: i32, %arg1: i32, %arg2: i32) -> (i32, i32, i32, i32) {
    %c0_i32 = arith.constant 0 : i32
    %c0_i32_0 = arith.constant 0 : i32
    return %arg0, %arg1, %arg2, %c0_i32 : i32, i32, i32, i32
  }
}

</mosaic_0001>

<bundles_post_ra>
// kernel: tpu_custom_call.1
= control target key start
LH: loop header
LB: loop body
LE: loop exit
PB: predicated region body
PF: predicated region fallthrough
CT: control target
= control target key end

     0   :  { %s2697_s0 = inlined_call_operand.hbm [shape: f32[2,8,32], index: 0, kind: input, shape index: {}]   ;;  %s2698_s1 = inlined_call_operand.hbm [shape: f32[2,8,32], index: 1, kind: input, shape index: {}]   ;;  %s2699_s2 = inlined_call_operand.hbm [shape: bf16[2,32,32], index: 2, kind: input, shape index: {}]   ;;  %s2700_s3 = inlined_call_operand.hbm [shape: bf16[2,32,32], index: 3, kind: input, shape index: {}]   ;;  %s2701_s4 = inlined_call_operand.hbm [shape: bf16[2,32,32], index: 4, kind: input, shape index: {}]   ;;  %s2702_s5 = inlined_call_operand.hbm [shape: bf16[2,32,32], index: 5, kind: input, shape index: {}]   ;;  %s2703_s6 = inlined_call_operand.vmem [shape: f32[4,32], index: 6, kind: input, shape index: {}]   ;;  %s2704_s7 = inlined_call_operand.hbm [shape: f32[2,8,32], index: 7, kind: output, shape index: {0}]   ;;  %s2705_s8 = inlined_call_operand.hbm [shape: f32[2,2,8,32], index: 8, kind: output, shape index: {1}]  }
   0x1   :  { %2745 = sst [smem:[#allocation48_spill]] %s2698_s1 }
   0x2   :  { %2746 = sst [smem:[#allocation49_spill]] %s2700_s3 }
   0x3   :  { %2747 = sst [smem:[#allocation50_spill]] %s2703_s6 }
   0x4   :  { %2748 = sst [smem:[#allocation51_spill]] %s2704_s7 }
   0x5   :  { %2749 = sst [smem:[#allocation52_spill]] %s2705_s8 }
   0x6   :  { %14 = vsyncpa [#allocation8], 0 }
   0x7   :  { %16 = vsyncpa [#allocation8 + $0x1], 0 }
   0x8   :  { %17 = vsyncpa [#allocation11], 0 }
   0x9   :  { %19 = vsyncpa [#allocation11 + $0x1], 0 }
   0xa   :  { %20 = vsyncpa [#allocation14], 0 }
   0xb   :  { %22 = vsyncpa [#allocation14 + $0x1], 0 }
   0xc   :  { %23 = vsyncpa [#allocation17], 0 }
   0xd   :  { %25 = vsyncpa [#allocation17 + $0x1], 0 }
   0xe   :  { %26 = vsyncpa [#allocation9], 0 }
   0xf   :  { %28 = vsyncpa [#allocation9 + $0x1], 0 }
  0x10   :  { %29 = vsyncpa [#allocation20], 0 }
  0x11   :  { %31 = vsyncpa [#allocation20 + $0x1], 0  ;;  %s2019_s27 = smov 0   ;;  %s2021_s28 = smov 0  }
  0x12   :  { %s2023_s29 = smov 0   ;;  %s2025_s30 = smov 0  }
  0x13   :  { %s2027_s9 = smov 0   ;;  %s2029_s10 = smov 0  }
  0x14   :  { %s2031_s11 = smov 0   ;;  %s2033_s12 = smov 0  }
  0x15   :  { %s2035_s13 = smov 0   ;;  %s2037_s14 = smov 0  }
  0x16   :  { %s2039_s15 = smov 0   ;;  %s2041_s16 = smov 0  }
  0x17   :  { %s2043_s17 = smov 0   ;;  %s2045_s18 = smov 0  }
  0x18 LB: > { %2750 = sst [smem:[#allocation28_spill]] %s1905_s27  ;;  %s2090_s19 = sadd.s32 4294967295, %s1957_s18   ;;  %s1957_s18 = sphi %s2045_s18, %s37_s18   ;;  %s1953_s17 = sphi %s2043_s17, %s2837_s17   ;;  %s1949_s16 = sphi %s2041_s16, %s2828_s16   ;;  %s1945_s15 = sphi %s2039_s15, %s2836_s15   ;;  %s1941_s14 = sphi %s2037_s14, %s2827_s14   ;;  %s1937_s13 = sphi %s2035_s13, %s2835_s13   ;;  %s1933_s12 = sphi %s2033_s12, %s2834_s12   ;;  %s1929_s11 = sphi %s2031_s11, %s2833_s11   ;;  %s1925_s10 = sphi %s2029_s10, %s2832_s10   ;;  %s1921_s9 = sphi %s2027_s9, %s2831_s9   ;;  %s1917_s30 = sphi %s2025_s30, %s2824_s30   ;;  %s1913_s29 = sphi %s2023_s29, %s2823_s29   ;;  %s1909_s28 = sphi %s2021_s28, %s2822_s28   ;;  %s1905_s27 = sphi %s2019_s27, %s2821_s27  }
  0x19   : > { %2751 = sst [smem:[#allocation29_spill]] %s1909_s28  ;;  %s1279_s20 = sadd.s32 4294967294, %s1957_s18  }
  0x1a   : > { %2752 = sst [smem:[#allocation30_spill]] %s1913_s29  ;;  %s52_s21 = sadd.s32 1, %s1949_s16 }
  0x1b   : > { %2753 = sst [smem:[#allocation31_spill]] %s1921_s9  ;;  %s56_s22 = sadd.s32 1, %s1953_s17 }
  0x1c   : > { %2754 = sst [smem:[#allocation32_spill]] %s1929_s11  ;;  %p54_p0 = scmp.ge.s32.totalorder %s52_s21, 2 }
  0x1d   : > { %2755 = sst [smem:[#allocation33_spill]] %s1941_s14  ;;  %s63_s23 = sadd.s32 1, %s1937_s13 }
  0x1e   : > { %2756 = sst [smem:[#allocation34_spill]] %s1945_s15  ;;  %p70_p1 = scmp.ne.s32.totalorder %s1937_s13, %s1933_s12 }
  0x1f   : > { %2757 = sst [smem:[#allocation35_spill]] %s1949_s16  ;;  %p71_p2 = scmp.eq.s32.totalorder %s1957_s18, 0 }
  0x20   : > { %2758 = sst [smem:[#allocation36_spill]] %s1957_s18  ;;  %s2839_s21 = smov (%p54_p0, %s52_s21), 0 }
  0x21   : > { %2759 = sst [smem:[#allocation37_spill]] %s2090_s19  ;;  %s2841_s22 = smov (!%p54_p0, %s56_s22), %s1953_s17 }
  0x22   : > { %2760 = sst [smem:[#allocation38_spill]] %s2839_s21  ;;  %p2107_p3 = por %p71_p2, %p70_p1 }
  0x23   : > { %p76_p4 = scmp.ne.s32.totalorder %s1933_s12, %s1929_s11  ;;  %p58_p5 = scmp.ge.s32.totalorder %s2841_s22, 2 }
  0x24   : > { %p77_p6 = scmp.eq.s32.totalorder %s2090_s19, 0  ;;  %s114_s25 = ssub.s32 %s1949_s16, %s2839_s21 }
  0x25   : > { %s117_s26 = sadd.s32 1, %s1925_s10  ;;  %s2843_s22 = smov (%p58_p5, %s2841_s22), 0 }
  0x26   : > { %2762 = sst [smem:[#allocation39_spill]] %s2843_s22  ;;  %p2124_p7 = por %p77_p6, %p76_p4 }
  0x27   : > { %p115_p8 = scmp.eq.s32.totalorder %s114_s25, 0  ;;  %s60_s7 = ssub.s32 %s1953_s17, %s2843_s22 }
  0x28   : > { %s2763_s8 = scalar_select %p2124_p7, 1, 0 }
  0x29   : > { %p124_p9 = scmp.ne.s32.totalorder %s1925_s10, %s1921_s9  ;;  %p61_p10 = scmp.eq.s32.totalorder %s60_s7, 0 }
  0x2a   : > { %p130_p11 = scmp.ne.s32.totalorder %s1921_s9, %s1917_s30  ;;  %p253_p0 = scmp.eq.s32.totalorder %s2090_s19, 3 }
  0x2b   : > { %s2135_s21 = scalar_select %p115_p8, %s1925_s10, %s117_s26  }
  0x2c   : > { %s2138_s15 = scalar_select %p61_p10, %s1937_s13, %s63_s23  }
  0x2d   : > { %2764 = sst [smem:[#allocation40_spill]] %s2135_s21  ;;  %p2142_p12 = por %p124_p9, %p71_p2 }
  0x2e   : > { %2765 = sst [smem:[#allocation41_spill]] %s2138_s15  ;;  %p2148_p13 = por %p130_p11, %p77_p6 }
  0x2f   : > { %p259_p5 = scmp.eq.s32.totalorder %s1279_s20, 3  ;;  %s267_s30 = sor.u32 %s114_s25, %s60_s7 }
  0x30   : > { %s2767_s22 = scalar_select %p2148_p13, 1, 0 }
  0x31   : > { %s272_s23 = sadd.s32 1, %s1913_s29  ;;  %p2157_p8 = por %p253_p0, %p70_p1 }
  0x32   : > { %2768 = sst [smem:[#allocation42_spill]] %s2767_s22  ;;  %p2164_p2 = por %p259_p5, %p76_p4 }
  0x33   : > { %s2769_s26 = scalar_select %p2157_p8, 1, 0 }
  0x34   : > { %s2771_s15 = scalar_select %p2164_p2, 1, 0 }
  0x35   : > { %2770 = sst [smem:[#allocation43_spill]] %s2769_s26  ;;  %p270_p6 = scmp.eq.s32.totalorder %s267_s30, 0 }
  0x36   : > { %2772 = sst [smem:[#allocation44_spill]] %s2771_s15  ;;  %p282_p9 = scmp.ne.s32.totalorder %s1913_s29, %s1909_s28 }
  0x37   : > { %p288_p10 = scmp.ne.s32.totalorder %s1909_s28, %s1905_s27  ;;  %p1442_p8 = scmp.lt.s32.totalorder %s1957_s18, 4 }
  0x38   : > { %s2173_s20 = scalar_select %p270_p6, %s1913_s29, %s272_s23  }
  0x39   : > { %p2175_p11 = por %p282_p9, %p253_p0  ;;  %p2179_p1 = por %p288_p10, %p259_p5 }
  0x3a   : > { %2773 = sst [smem:[#allocation45_spill]] %s2173_s20  ;;  %s2717_s21 = sand.u32 1, %s1937_s13  }
  0x3b   : > { %s2774_s7 = scalar_select %p2175_p11, 1, 0 }
  0x3c   : > { %s2776_s25 = scalar_select %p2179_p1, 1, 0 }
  0x3d   : > { %2775 = sst [smem:[#allocation46_spill]] %s2774_s7  ;;  %s2187_s11 = sshll.u32 %s2717_s21, 3 }
  0x3e   : > { %2777 = sst [smem:[#allocation47_spill]] %s2776_s25  ;;  %s2723_s30 = sshll.u32 %s1953_s17, 7 }
  0x3f   : > { %p2192_p4 = pnand %p1442_p8, %p2107_p3  ;;  %s2725_s23 = sand.u32 1, %s1957_s18  }
  0x40   : > { %s2779_s1 = sld [smem:[#allocation48_spill]]  ;;  %s334_s21 = scalar_lea.vmem [#allocation10], %s2187_s11 }
  0x41   : > { %s2778_s27 = scalar_select %p2192_p4, 1, 0 }
  0x42   : > { %s342_s15 = sshll.u32 %s334_s21, 4  ;;  %p2207_p3 = pnand %p1442_p8, %p2142_p12  ;;  %s2211_s15 = int_to_ptr.vmem [resolvable:$true] %s342_s15 }
  0x43   : > { %s2215_s7 = scalar_lea.sflag [#allocation11], %s2725_s23  ;;  %p2734_p5 = pneg %p2192_p4 }
  0x44   : > { %s2780_s24 = scalar_select %p2207_p3, 1, 0 }
  0x46   : > { %s2202_s25 = scalar_lea.hbm %s2779_s1, %s2723_s30  ;;  %s1588_s6 = scalar_lea.hbm %s2779_s1, 256 }
  0x47   : > { %s1583_s26 = scalar_lea.hbm %s2202_s25, 128  ;;  %p1589_p12 = scmp.lt.u32.totalorder %s2202_s25, %s2779_s1 }
  0x48   : > { %p1584_p0 = scmp.ne.s32.totalorder %s2202_s25, %s1583_s26  ;;  %p1590_p8 = scmp.lt.u32.totalorder %s1588_s6, %s1583_s26 }
  0x49   : > { %p1592_p1 = scmp.lt.u32.totalorder %s1583_s26, %s2202_s25 }
  0x4a   : > { %p1586_p6 = pnand %p2734_p5, %p1584_p0  ;;  %p1591_p10 = por %p1590_p8, %p1589_p12 }
  0x4c   : > { %p1587_p9 = pneg %p1586_p6  ;;  %p1593_p2 = por %p1592_p1, %p1591_p10 }
  0x4e   : > { %p1594_p11 = pnand %p1593_p2, %p1587_p9 }
  0x50   : > { %1597 = shalt.err (!%p1594_p11)
}
  0x51   : > { %s1598_s23 = scalar_lea.vmem %s2211_s15, 128  ;;  %s1959_s29 = smov [#allocation10]  }
  0x52   : > { %p1599_p0 = scmp.ne.s32.totalorder %s2211_s15, %s1598_s23  ;;  %s1603_s21 = sshll.u32 %s1959_s29, 4  ;;  %s1604_s21 = int_to_ptr.vmem [resolvable:$false] %s1603_s21 }
  0x53   : > { %s1605_s30 = scalar_lea.vmem %s1604_s21, 256  ;;  %p1606_p7 = scmp.lt.s32.totalorder %s2211_s15, %s1604_s21 }
  0x54   : > { %p1601_p6 = pnand %p1599_p0, %p2734_p5  ;;  %p1607_p12 = scmp.lt.s32.totalorder %s1605_s30, %s1598_s23 }
  0x56   : > { %p1602_p13 = pneg %p1601_p6  ;;  %p1608_p8 = por %p1607_p12, %p1606_p7 }
  0x58   : > { %p1609_p1 = pnand %p1608_p8, %p1602_p13 }
  0x5a   : > { %1612 = shalt.err (!%p1609_p1)
}
  0x5b   : > { %1422 = dma.hbm_to_vmem [thread:$0]  (!%p2192_p4), %s2202_s25, 128, %s2211_s15, %s2215_s7  }
  0x5c   : > { %p1298_p2 = scmp.ge.s32.totalorder %s1957_s18, 1  ;;  %p431_p11 = scmp.lt.s32.totalorder %s1957_s18, 5 }
  0x5d   : > { %s2728_s26 = sand.u32 1, %s1925_s10   ;;  %s2251_s6 = sshll.u32 %s1949_s16, 8 }
  0x5e   : > { %s2248_s23 = sshll.u32 %s2728_s26, 4  ;;  %p2253_p7 = pnand %p1298_p2, %p431_p11 }
  0x5f   : > { %s2782_s3 = sld [smem:[#allocation49_spill]]  ;;  %s374_s15 = scalar_lea.vmem [#allocation13], %s2248_s23 }
  0x60   : > { %s2781_s20 = scalar_select %p2253_p7, 1, 0 }
  0x61   : > { %s381_s25 = sshll.u32 %s374_s15, 4  ;;  %s2783_s26 = sand.u32 1, %s1957_s18   ;;  %s2264_s25 = int_to_ptr.vmem [resolvable:$true] %s381_s25 }
  0x62   : > { %s2268_s1 = scalar_lea.sflag [#allocation14], %s2783_s26  ;;  %p2274_p9 = pneg %p2207_p3 }
  0x65   : > { %s2261_s30 = scalar_lea.hbm %s2782_s3, %s2251_s6  ;;  %s1618_s15 = scalar_lea.hbm %s2782_s3, 512 }
  0x66   : > { %s1613_s16 = scalar_lea.hbm %s2261_s30, 256  ;;  %p1619_p6 = scmp.lt.u32.totalorder %s2261_s30, %s2782_s3 }
  0x67   : > { %p1614_p13 = scmp.ne.s32.totalorder %s2261_s30, %s1613_s16  ;;  %p1620_p12 = scmp.lt.u32.totalorder %s1618_s15, %s1613_s16 }
  0x68   : > { %p1622_p1 = scmp.lt.u32.totalorder %s1613_s16, %s2261_s30 }
  0x69   : > { %p1616_p10 = pnand %p2274_p9, %p1614_p13  ;;  %p1621_p8 = por %p1620_p12, %p1619_p6 }
  0x6b   : > { %p1617_p0 = pneg %p1616_p10  ;;  %p1623_p2 = por %p1622_p1, %p1621_p8 }
  0x6d   : > { %p1624_p11 = pnand %p1623_p2, %p1617_p0 }
  0x6f   : > { %1627 = shalt.err (!%p1624_p11)
}
  0x70   : > { %s1628_s26 = scalar_lea.vmem %s2264_s25, 256  ;;  %s1960_s29 = smov [#allocation13]  }
  0x71   : > { %p1629_p13 = scmp.ne.s32.totalorder %s2264_s25, %s1628_s26  ;;  %s1633_s21 = sshll.u32 %s1960_s29, 4  ;;  %s1634_s21 = int_to_ptr.vmem [resolvable:$false] %s1633_s21 }
  0x72   : > { %s1635_s28 = scalar_lea.vmem %s1634_s21, 512  ;;  %p1636_p7 = scmp.lt.s32.totalorder %s2264_s25, %s1634_s21 }
  0x73   : > { %p1631_p10 = pnand %p1629_p13, %p2274_p9  ;;  %p1637_p4 = scmp.lt.s32.totalorder %s1635_s28, %s1628_s26 }
  0x75   : > { %p1632_p5 = pneg %p1631_p10  ;;  %p1638_p6 = por %p1637_p4, %p1636_p7 }
  0x77   : > { %p1639_p12 = pnand %p1638_p6, %p1632_p5 }
  0x79   : > { %1642 = shalt.err (!%p1639_p12)
}
  0x7a   : > { %s2741_s16 = smov 64   ;;  %s1962_s22 = smov 4  }
  0x7b   : > { %1428 = dma.hbm_to_vmem [thread:$0]  (!%p2207_p3), %s2261_s30, 256, %s2264_s25, %s2268_s1, %s2741_s16, %s2741_s16, %s1962_s22  }
  0x7c   : > { %s2785_s15 = sshll.u32 %s1953_s17, 7  ;;  %s316_s28 = scalar_lea.vmem [#allocation7], %s2187_s11 }
  0x7d   : > { %s2306_s21 = scalar_lea.hbm %s2697_s0, %s2785_s15  ;;  %s323_s3 = sshll.u32 %s316_s28, 4  ;;  %s2309_s3 = int_to_ptr.vmem [resolvable:$true] %s323_s3 }
  0x7e   : > { %s2315_s19 = scalar_lea.hbm %s2699_s2, %s2251_s6  ;;  %s2786_s30 = sand.u32 1, %s1937_s13  }
  0x7f   : > { %s313_s25 = scalar_lea.sflag [#allocation8], %s2786_s30  ;;  %s1643_s16 = scalar_lea.hbm %s2306_s21, 128 }
  0x80   : > { %p1644_p4 = scmp.ne.s32.totalorder %s2306_s21, %s1643_s16  ;;  %p2787_p5 = scmp.ne.s32.totalorder %s2778_s27, 0 }
  0x81   : > { %s1648_s11 = scalar_lea.hbm %s2697_s0, 256  ;;  %p1649_p1 = scmp.lt.u32.totalorder %s2306_s21, %s2697_s0 }
  0x82   : > { %p2788_p7 = pneg %p2787_p5  ;;  %p1650_p2 = scmp.lt.u32.totalorder %s1648_s11, %s1643_s16 }
  0x83   : > { %p1652_p13 = scmp.lt.u32.totalorder %s1643_s16, %s2306_s21 }
  0x84   : > { %p1646_p0 = pnand %p1644_p4, %p2788_p7  ;;  %p1651_p11 = por %p1650_p2, %p1649_p1 }
  0x86   : > { %p1647_p8 = pneg %p1646_p0  ;;  %p1653_p10 = por %p1652_p13, %p1651_p11 }
  0x88   : > { %p1654_p6 = pnand %p1653_p10, %p1647_p8 }
  0x8a   : > { %1657 = shalt.err (!%p1654_p6)
}
  0x8b   : > { %s1658_s9 = scalar_lea.vmem %s2309_s3, 128  ;;  %p2789_p4 = pmov %p2788_p7 }
  0x8c   : > { %p1659_p12 = scmp.ne.s32.totalorder %s2309_s3, %s1658_s9  ;;  %s1963_s18 = smov [#allocation7]  }
  0x8d   : > { %s1663_s30 = sshll.u32 %s1963_s18, 4  ;;  %s1664_s30 = int_to_ptr.vmem [resolvable:$false] %s1663_s30 }
  0x8e   : > { %p1661_p7 = pnand %p1659_p12, %p2789_p4  ;;  %s1665_s15 = scalar_lea.vmem %s1664_s30, 256 }
  0x8f   : > { %p1666_p3 = scmp.lt.s32.totalorder %s2309_s3, %s1664_s30  ;;  %p1667_p1 = scmp.lt.s32.totalorder %s1665_s15, %s1658_s9 }
  0x90   : > { %p1662_p0 = pneg %p1661_p7 }
  0x91   : > { %p1668_p2 = por %p1667_p1, %p1666_p3 }
  0x93   : > { %p1669_p11 = pnand %p1668_p2, %p1662_p0 }
  0x95   : > { %1672 = shalt.err (!%p1669_p11)
}
  0x96   : > { %1419 = dma.hbm_to_vmem [thread:$0]  (!%p2787_p5), %s2306_s21, 128, %s2309_s3, %s313_s25  }
  0x97   : > { %s353_s16 = scalar_lea.vmem [#allocation12], %s2248_s23  ;;  %s2349_s28 = scalar_lea.hbm %s2701_s4, %s2251_s6 }
  0x98   : > { %s360_s26 = sshll.u32 %s353_s16, 4  ;;  %s1673_s27 = scalar_lea.hbm %s2315_s19, 256  ;;  %s2343_s26 = int_to_ptr.vmem [resolvable:$true] %s360_s26 }
  0x99   : > { %p1674_p3 = scmp.ne.s32.totalorder %s2315_s19, %s1673_s27  ;;  %s1678_s30 = scalar_lea.hbm %s2699_s2, 512 }
  0x9a   : > { %p1679_p5 = scmp.lt.u32.totalorder %s2315_s19, %s2699_s2  ;;  %p1680_p10 = scmp.lt.u32.totalorder %s1678_s30, %s1673_s27 }
  0x9b   : > { %p1676_p8 = pnand %p1674_p3, %p2274_p9  ;;  %p1682_p12 = scmp.lt.u32.totalorder %s1673_s27, %s2315_s19 }
  0x9c   : > { %p1681_p6 = por %p1680_p10, %p1679_p5 }
  0x9d   : > { %p1677_p13 = pneg %p1676_p8 }
  0x9e   : > { %p1683_p4 = por %p1682_p12, %p1681_p6 }
  0xa0   : > { %p1684_p7 = pnand %p1683_p4, %p1677_p13 }
  0xa2   : > { %1687 = shalt.err (!%p1684_p7)
}
  0xa3   : > { %s1688_s21 = scalar_lea.vmem %s2343_s26, 256  ;;  %s1964_s25 = smov [#allocation12]  }
  0xa4   : > { %p1689_p0 = scmp.ne.s32.totalorder %s2343_s26, %s1688_s21  ;;  %s1693_s16 = sshll.u32 %s1964_s25, 4  ;;  %s1694_s16 = int_to_ptr.vmem [resolvable:$false] %s1693_s16 }
  0xa5   : > { %s1695_s11 = scalar_lea.vmem %s1694_s16, 512  ;;  %p1696_p11 = scmp.lt.s32.totalorder %s2343_s26, %s1694_s16 }
  0xa6   : > { %p1691_p1 = pnand %p1689_p0, %p2274_p9  ;;  %p1697_p3 = scmp.lt.s32.totalorder %s1695_s11, %s1688_s21 }
  0xa8   : > { %p1692_p2 = pneg %p1691_p1  ;;  %p1698_p8 = por %p1697_p3, %p1696_p11 }
  0xaa   : > { %p1699_p5 = pnand %p1698_p8, %p1692_p2 }
  0xac   : > { %1702 = shalt.err (!%p1699_p5)
}
  0xad   : > { %p2790_p13 = scmp.ne.s32.totalorder %s2780_s24, 0  ;;  %s2791_s29 = smov 64  }
  0xae   : > { %s395_s27 = scalar_lea.vmem [#allocation15], %s2248_s23  ;;  %s1703_s18 = scalar_lea.hbm %s2349_s28, 256 }
  0xaf   : > { %1425 = dma.hbm_to_vmem [thread:$0]  (!%p2790_p13), %s2315_s19, 256, %s2343_s26, %s2215_s7, %s2791_s29, %s2791_s29, %s1962_s22  }
  0xb0   : > { %s402_s9 = sshll.u32 %s395_s27, 4  ;;  %p1704_p10 = scmp.ne.s32.totalorder %s2349_s28, %s1703_s18  ;;  %s2377_s9 = int_to_ptr.vmem [resolvable:$true] %s402_s9 }
  0xb1   : > { %s1708_s3 = scalar_lea.hbm %s2701_s4, 512  ;;  %p1709_p4 = scmp.lt.u32.totalorder %s2349_s28, %s2701_s4 }
  0xb2   : > { %p1706_p6 = pnand %p1704_p10, %p2274_p9  ;;  %p1710_p7 = scmp.lt.u32.totalorder %s1708_s3, %s1703_s18 }
  0xb3   : > { %p1712_p1 = scmp.lt.u32.totalorder %s1703_s18, %s2349_s28 }
  0xb4   : > { %p1707_p12 = pneg %p1706_p6  ;;  %p1711_p0 = por %p1710_p7, %p1709_p4 }
  0xb6   : > { %p1713_p2 = por %p1712_p1, %p1711_p0 }
  0xb8   : > { %p1714_p11 = pnand %p1713_p2, %p1707_p12 }
  0xba   : > { %1717 = shalt.err (!%p1714_p11)
}
  0xbb   : > { %s1718_s19 = scalar_lea.vmem %s2377_s9, 256  ;;  %s1965_s7 = smov [#allocation15]  }
  0xbc   : > { %p1719_p3 = scmp.ne.s32.totalorder %s2377_s9, %s1718_s19  ;;  %s1723_s26 = sshll.u32 %s1965_s7, 4  ;;  %s1724_s26 = int_to_ptr.vmem [resolvable:$false] %s1723_s26 }
  0xbd   : > { %s1725_s16 = scalar_lea.vmem %s1724_s26, 512  ;;  %p1726_p10 = scmp.lt.s32.totalorder %s2377_s9, %s1724_s26 }
  0xbe   : > { %p1721_p8 = pnand %p1719_p3, %p2274_p9  ;;  %p1727_p6 = scmp.lt.s32.totalorder %s1725_s16, %s1718_s19 }
  0xc0   : > { %p1722_p5 = pneg %p1721_p8  ;;  %p1728_p4 = por %p1727_p6, %p1726_p10 }
  0xc2   : > { %p1729_p7 = pnand %p1728_p4, %p1722_p5 }
  0xc4   : > { %1732 = shalt.err (!%p1729_p7)
}
  0xc5   : > { %1431 = dma.hbm_to_vmem [thread:$0]  (!%p2790_p13), %s2349_s28, 256, %s2377_s9, %s2268_s1, %s2791_s29, %s2791_s29, %s1962_s22  }
  0xc6   : > { %s2408_s18 = scalar_lea.hbm %s2702_s5, %s2251_s6  ;;  %s416_s30 = scalar_lea.vmem [#allocation16], %s2248_s23 }
  0xc7   : > { %s423_s15 = sshll.u32 %s416_s30, 4  ;;  %s2792_s3 = sand.u32 1, %s1925_s10   ;;  %s2411_s15 = int_to_ptr.vmem [resolvable:$true] %s423_s15 }
  0xc8   : > { %s2415_s21 = scalar_lea.sflag [#allocation17], %s2792_s3  ;;  %s1733_s25 = scalar_lea.hbm %s2408_s18, 256 }
  0xc9   : > { %p1734_p12 = scmp.ne.s32.totalorder %s2408_s18, %s1733_s25  ;;  %s1738_s6 = scalar_lea.hbm %s2702_s5, 512 }
  0xca   : > { %p1739_p2 = scmp.lt.u32.totalorder %s2408_s18, %s2702_s5  ;;  %p1740_p11 = scmp.lt.u32.totalorder %s1738_s6, %s1733_s25 }
  0xcb   : > { %p1736_p0 = pnand %p1734_p12, %p2274_p9  ;;  %p1742_p8 = scmp.lt.u32.totalorder %s1733_s25, %s2408_s18 }
  0xcc   : > { %p1741_p3 = por %p1740_p11, %p1739_p2 }
  0xcd   : > { %p1737_p1 = pneg %p1736_p0 }
  0xce   : > { %p1743_p5 = por %p1742_p8, %p1741_p3 }
  0xd0   : > { %p1744_p10 = pnand %p1743_p5, %p1737_p1 }
  0xd2   : > { %1747 = shalt.err (!%p1744_p10)
}
  0xd3   : > { %s1748_s23 = scalar_lea.vmem %s2411_s15, 256  ;;  %s1966_s7 = smov [#allocation16]  }
  0xd4   : > { %p1749_p6 = scmp.ne.s32.totalorder %s2411_s15, %s1748_s23  ;;  %s1753_s26 = sshll.u32 %s1966_s7, 4  ;;  %s1754_s26 = int_to_ptr.vmem [resolvable:$false] %s1753_s26 }
  0xd5   : > { %s1755_s16 = scalar_lea.vmem %s1754_s26, 512  ;;  %p1756_p12 = scmp.lt.s32.totalorder %s2411_s15, %s1754_s26 }
  0xd6   : > { %p1751_p4 = pnand %p1749_p6, %p2274_p9  ;;  %p1757_p0 = scmp.lt.s32.totalorder %s1755_s16, %s1748_s23 }
  0xd8   : > { %p1752_p7 = pneg %p1751_p4  ;;  %p1758_p2 = por %p1757_p0, %p1756_p12 }
  0xda   : > { %p1759_p11 = pnand %p1758_p2, %p1752_p7 }
  0xdc   : > { %1762 = shalt.err (!%p1759_p11)
}
  0xdd   : > { %1434 = dma.hbm_to_vmem [thread:$0]  (!%p2790_p13), %s2408_s18, 256, %s2411_s15, %s2415_s21, %s2791_s29, %s2791_s29, %s1962_s22  }
  0xde   : > { %p2793_p9 = scmp.ne.s32.totalorder %s2781_s20, 0 }
  0xdf   : > { %s2445_s14 = sand.u32 (!%p2793_p9), 1, %s1933_s12   ;;  %p2794_p1 = scmp.ne.s32.totalorder (!%p2793_p9), %s2763_s8, 0 }
  0xe0   : > { %435 = sbr.rel (%p2793_p9) target bundleno = 1892 (0x764), region = 48  ;;  %s2448_s11 = sshll.u32 (!%p2793_p9), %s2445_s14, 3 }
  0xe1   : > { %s438_s24 = scalar_lea.sflag (!%p2793_p9), [#allocation8], %s2445_s14  ;;  %s441_s27 = scalar_lea.vmem (!%p2793_p9), [#allocation7], %s2448_s11 }
  0xe7   : > { %1876 = dma.done.wait (%p2794_p1), %s438_s24, 128  }
  0xe8   : > { %1878 = vsyncadd (%p2794_p1), %s438_s24, 4294967168  ;;  %s2795_s22 = sld [smem:[#allocation37_spill]]  ;;  %s450_s18 = scalar_lea.vmem [#allocation10], %s2448_s11 }
  0xee   : > { %s446_s20 = sand.u32 1, %s2795_s22  }
  0xef   : > { %s447_s29 = scalar_lea.sflag [#allocation11], %s446_s20 }
  0xf0   : > { %1880 = dma.done.wait (%p2794_p1), %s447_s29, 128  }
  0xf1   : > { %1882 = vsyncadd (%p2794_p1), %s447_s29, 4294967168  ;;  %s2796_s30 = sld [smem:[#allocation31_spill]]  ;;  %s2797_s15 = sld [smem:[#allocation42_spill]] }
  0xf7   : > { %s457_s3 = sand.u32 1, %s2796_s30   ;;  %p2798_p13 = scmp.ne.s32.totalorder %s2797_s15, 0 }
  0xf8   : > { %s2463_s21 = sshll.u32 %s457_s3, 4 }
  0xf9   : > { %s459_s25 = scalar_lea.vmem [#allocation12], %s2463_s21 }
  0xfa   : > { %1884 = dma.done.wait (%p2798_p13), %s447_s29, 256  }
  0xfb   : > { %1886 = vsyncadd (%p2798_p13), %s447_s29, 4294967040  ;;  %s465_s1 = scalar_lea.sflag [#allocation14], %s446_s20  ;;  %s468_s28 = scalar_lea.vmem [#allocation13], %s2463_s21 }
  0xfc   : > { %1888 = dma.done.wait (%p2798_p13), %s465_s1, 512  }
  0xfd   : > { %1890 = vsyncadd (%p2798_p13), %s465_s1, 4294966784  ;;  %s477_s8 = scalar_lea.vmem [#allocation15], %s2463_s21  ;;  %s483_s6 = scalar_lea.sflag [#allocation17], %s457_s3 }
  0xfe   : > { %s486_s9 = scalar_lea.vmem [#allocation16], %s2463_s21 }
  0xff   : > { %1892 = dma.done.wait (%p2798_p13), %s483_s6, 256  }
 0x100   : > { %1894 = vsyncadd (%p2798_p13), %s483_s6, 4294967040  ;;  %s2799_s19 = sld [smem:[#allocation29_spill]]  ;;  %s2800_s23 = sld [smem:[#allocation33_spill]] }
 0x101   : > { %s2801_s22 = sld [smem:[#allocation50_spill]]  ;;  %s541_s6 = scalar_lea.vmem [#allocation18], %s2448_s11 }
 0x106   : > { %s546_s7 = sand.u32 1, %s2799_s19   ;;  %p554_p3 = scmp.eq.s32.totalorder %s2800_s23, 0 }
 0x107   : > { %s2484_s26 = sshll.u32 %s546_s7, 3  ;;  %v2490_v0 = vld [vmem:[%s2801_s22] ss:$0 sm:$0xff]  ;;  %v2495_v1 = vld [vmem:[%s2801_s22 + $0x1] ss:$0 sm:$0xff]  ;;  %vm560_vm0 = vcmask (%p554_p3), 261120  }
 0x108   : > { %v2500_v2 = vld [vmem:[%s2801_s22 + $0x2] ss:$0 sm:$0xff]  ;;  %v2505_v3 = vld [vmem:[%s2801_s22 + $0x3] ss:$0 sm:$0xff]  ;;  %s548_s19 = scalar_lea.vmem [#allocation19], %s2484_s26  ;;  %559 = sbr.rel (!%p554_p3) target bundleno = 271 (0x10f), region = 76 }
 0x109   : > { %v1967_v4 = vmov (%p554_p3), 0.0  }
 0x10a   : > { %561 = vst.msk [vmem:[#allocation6] sm:$0xff] (%p554_p3), %vm560_vm0, %v1967_v4 }
 0x10f PF: > { %v1565_v5 = vld [vmem:[%s459_s25] sm:$0xff]   ;;  %v1968_v6 = vmov 0.0   ;;  %v1567_v8 = vld [vmem:[%s459_s25 + $0x8] sm:$0xff]   ;;  %vm1969_vm1 = vmmov 0   ;;  %vm568_vm2 = vcmask 261120   ;;  %vm849_vm3 = vcmask 64512  }
 0x110   : > { %1356 = vmatprep.subr.bf16.mxu0 %v1968_v6  ;;  %1364 = vmatprep.subr.bf16.mxu1 %v1968_v6  ;;  %v1566_v7 = vld [vmem:[%s468_s28] sm:$0xff]   ;;  %v1568_v9 = vld [vmem:[%s468_s28 + $0x8] sm:$0xff]   ;;  %569 = vst.msk [vmem:[#allocation5] sm:$0xff] %vm568_vm2, %v1968_v6  ;;  %vm565_vm4 = vcmask 7168   ;;  %v1970_v59 = vmov -inf   ;;  %v1971_v60 = vmov 0  }
 0x111   : > { %1357 = vmatpush3.bf16.msra.mxu0 %v1565_v5  ;;  %1360 = vmatprep.mubr.msk.bf16.mxu0 %vm1969_vm1, %v1968_v6  ;;  %v570_v10 = vld [vmem:[%s441_s27] sm:$0xff]  ;;  %v656_v11 = vld [vmem:[%s450_s18] sm:$0xff]  ;;  %566 = vst.msk [vmem:[#allocation3] sm:$0xff] %vm565_vm4, %v1970_v59  ;;  %567 = vst.msk [vmem:[#allocation4] sm:$0xff] %vm565_vm4, %v1968_v6  ;;  %vm885_vm5 = vcmask 1043456   ;;  %s2802_s27 = sld [smem:[#allocation33_spill]] }
 0x112   : > { %1365 = vmatpush3.bf16.msra.mxu1 %v1566_v7  ;;  %1358 = vmatprep.subr.bf16.mxu0 %v1968_v6  ;;  %v571_v12 = vpack.c.bf16 %v570_v10, %v570_v10  ;;  %v2531_v13 = vpack.c.bf16 %v656_v11, %v656_v11  ;;  %v1569_v52 = vld [vmem:[%s477_s8] sm:$0xff]   ;;  %v1570_v53 = vld [vmem:[%s477_s8 + $0x8] sm:$0xff]  }
 0x113   : > { %1366 = vmatprep.subr.bf16.mxu1 %v1968_v6  ;;  %1368 = vmatprep.mubr.msk.bf16.mxu1 %vm1969_vm1, %v1968_v6 }
 0x114   : > { %1563 = vset.pattern.permute.xlu1 %v1971_v60  ;;  %1564 = vset.pattern.permute.xlu0 %v1971_v60 }
 0x115   : > { %1359 = vmatpush3.bf16.msra.mxu0 %v1567_v8 }
 0x116   : > { %1367 = vmatpush3.bf16.msra.mxu1 %v1568_v9  ;;  %1372 = vmatprep.subr.bf16.mxu0 %v1968_v6 }
 0x117   : > { %1380 = vmatprep.subr.bf16.mxu1 %v1968_v6  ;;  %p1007_p8 = scmp.eq.s32.totalorder %s2802_s27, 1 }
 0x118   : > { %1361 = vmatmul.mubr.msk.bf16.vlgmr.msra.gmra.mrb[0].mxu0 %vm568_vm2, %v571_v12  ;;  %v848_v61 = vld [vmem:[#allocation3] sm:$0xff] }
 0x119   : > { %1369 = vmatmul.mubr.msk.bf16.vlgmr.msra.gmra.mrb[0].mxu1 %vm568_vm2, %v2531_v13  ;;  %1376 = vmatprep.mubr.msk.bf16.mxu0 %vm1969_vm1, %v1968_v6 }
 0x11a   : > { %1382 = vmatprep.mubr.msk.bf16.mxu1 %vm1969_vm1, %v1968_v6  ;;  %1373 = vmatpush3.bf16.msra.mxu0 %v1569_v52 }
 0x11b   : > { %1374 = vmatprep.subr.bf16.mxu0 %v1968_v6 }
 0x11e   : > { %1375 = vmatpush3.bf16.msra.mxu0 %v1570_v53 }
 0x11f   : > { %1386 = vmatprep.subr.bf16.mxu0 %v1968_v6 }
 0x121   : > { %1377 = vmatmul.mubr.msk.bf16.vlgmr.msra.gmra.mrb[4].mxu0 %vm568_vm2, %v2531_v13 }
 0x122   : > { %1388 = vmatprep.mubr.msk.bf16.mxu0 %vm1969_vm1, %v1968_v6 }
 0x1eb   : > { %v625_v14 = vpop.f32.mrb[0].mxu0 }
 0x1ec   : > { %v1362_v15 = vpop.f32.mrb[1].mxu0  ;;  %v712_v16 = vpop.f32.mrb[0].mxu1  ;;  %v631_v17 = vsel %vm568_vm2, %v625_v14, 0.0 }
 0x1ed   : > { %v1370_v18 = vpop.f32.mrb[1].mxu1  ;;  %632 = vadd.xlane.f32.xlu0 %v631_v17  ;;  %v628_v19 = vpop.f32.mrb[2].mxu0  ;;  %v774_v22 = vsel %vm568_vm2, %v712_v16, 0.0  ;;  %v865_v17 = vld [vmem:[#allocation4] sm:$0xff] }
 0x1ee   : > { %v1363_v20 = vpop.f32.mrb[3].mxu0  ;;  %v715_v21 = vpop.f32.mrb[2].mxu1 }
 0x1ef   : > { %v1371_v23 = vpop.f32.mrb[3].mxu1 }
 0x1f0   : > { %v1572_v23 = vld [vmem:[%s486_s9 + $0x8] sm:$0xff]  }
 0x1f1   : > { %775 = vadd.xlane.f32.xlu0 %v774_v22 }
 0x27a   : > { %v633_v24 = vpop.xlane.xlu0 %632 }
 0x27b   : > { %v635_v25 = vmul.f32 0.03125, %v633_v24  ;;  %v873_v24 = vld [vmem:[#allocation5] sm:$0xff] }
 0x27d   : > { %v636_v26 = vsub.f32 %v625_v14, %v635_v25 }
 0x27e   : > { %v776_v27 = vpop.xlane.xlu0 %775 }
 0x27f   : > { %v778_v28 = vmul.f32 0.03125, %v776_v27  ;;  %v637_v29 = vmul.f32 %v636_v26, %v636_v26 }
 0x281   : > { %v779_v30 = vsub.f32 %v712_v16, %v778_v28  ;;  %v638_v31 = vsel %vm568_vm2, %v637_v29, 0.0  ;;  %v1571_v16 = vld [vmem:[%s486_s9] sm:$0xff]  }
 0x282   : > { %639 = vadd.xlane.f32.xlu1 %v638_v31 }
 0x283   : > { %v780_v32 = vmul.f32 %v779_v30, %v779_v30 }
 0x285   : > { %v781_v33 = vsel %vm568_vm2, %v780_v32, 0.0 }
 0x286   : > { %782 = vadd.xlane.f32.xlu1 %v781_v33 }
 0x30f   : > { %v640_v34 = vpop.xlane.xlu1 %639 }
 0x310   : > { %v641_v35 = vmul.f32 0.03125, %v640_v34 }
 0x312   : > { %v642_v36 = vadd.f32 1e-05, %v641_v35  ;;  %v944_v35 = vld [vmem:[#allocation6] sm:$0xff] }
 0x313   : > { %v783_v37 = vpop.xlane.xlu1 %782 }
 0x314   : > { %1573 = vrsqrt.f32 %v642_v36  ;;  %v784_v38 = vmul.f32 0.03125, %v783_v37 }
 0x316   : > { %v785_v39 = vadd.f32 1e-05, %v784_v38 }
 0x318   : > { %1575 = vrsqrt.f32 %v785_v39 }
 0x31e   : > { %v1574_v40 = vpop.eup %1573 }
 0x31f   : > { %v644_v41 = vmul.f32 %v1574_v40, %v636_v26 }
 0x321   : > { %v649_v42 = vmul.f32 %v2490_v0, %v644_v41 }
 0x322   : > { %v1576_v43 = vpop.eup %1575 }
 0x323   : > { %v654_v44 = vadd.f32 %v2495_v1, %v649_v42  ;;  %v787_v45 = vmul.f32 %v1576_v43, %v779_v30  ;;  %v768_v1 = vpop.f32.mrb[4].mxu0 }
 0x325   : > { %655 = vst.msk [vmem:[#allocation2] sm:$0xff] %vm568_vm2, %v654_v44  ;;  %v792_v46 = vmul.f32 %v2500_v2, %v787_v45  ;;  %v881_v2 = vpack.c.bf16 %v768_v1, %v768_v1 }
 0x327   : > { %v797_v47 = vadd.f32 %v2505_v3, %v792_v46  ;;  %v1378_v3 = vpop.f32.mrb[5].mxu0  ;;  %v887_v5 = vsel %vm885_vm5, %v881_v2, 0 }
 0x328   : > { %v771_v4 = vpop.f32.mrb[6].mxu0  ;;  %1387 = vmatpush3.bf16.msra.mxu0 %v887_v5 }
 0x329   : > { %798 = vst.msk [vmem:[%s548_s19] sm:$0xff] %vm568_vm2, %v797_v47  ;;  %v801_v48 = vpack.c.bf16 %v797_v47, %v797_v47  ;;  %v1379_v7 = vpop.f32.mrb[7].mxu0 }
 0x32b   : > { %v806_v49 = vsel %vm568_vm2, %v801_v48, 0 }
 0x32c   : > { %1381 = vmatpush3.bf16.xpose.msra.mxu1 %v806_v49  ;;  %v799_v50 = vld [vmem:[#allocation2] sm:$0xff] }
 0x32d   : > { %1392 = vmatprep.subr.bf16.mxu1 %v1968_v6  ;;  %v800_v51 = vpack.c.bf16 %v799_v50, %v799_v50 }
 0x333   : > { %1383 = vmatmul.mubr.msk.bf16.vlgmr.msra.gmra.mrb[4].mxu1 %vm568_vm2, %v800_v51 }
 0x334   : > { %1396 = vmatprep.mubr.msk.bf16.mxu1 %vm1969_vm1, %v1968_v6  ;;  %1393 = vmatpush3.bf16.msra.mxu1 %v1571_v16 }
 0x335   : > { %1394 = vmatprep.subr.bf16.mxu1 %v1968_v6 }
 0x338   : > { %1395 = vmatpush3.bf16.msra.mxu1 %v1572_v23 }
 0x406   : > { %v842_v54 = vpop.f32.mrb[4].mxu1 }
 0x407   : > { %v1384_v55 = vpop.f32.mrb[5].mxu1  ;;  %v850_v56 = vsel %vm849_vm3, %v842_v54, -inf }
 0x408   : > { %851 = vmax.xlane.f32.xlu0 %v850_v56  ;;  %v845_v57 = vpop.f32.mrb[6].mxu1 }
 0x409   : > { %v1385_v58 = vpop.f32.mrb[7].mxu1 }
 0x495   : > { %v852_v62 = vpop.xlane.xlu0 %851 }
 0x496   : > { %v853_v63 = vmax.f32 %v848_v61, %v852_v62 }
 0x498   : > { %v854_v0 = vsub.f32 %v848_v61, %v853_v63  ;;  %931 = vst.msk [vmem:[#allocation3] sm:$0xff] %vm565_vm4, %v853_v63  ;;  %859 = vperm.xlu1 %1563, %v853_v63  }
 0x49a   : > { %v855_v14 = vmul.f32 1.442695, %v854_v0 }
 0x517   : > { %v860_v8 = vpop.permute.xlu1 %859 }
 0x518   : > { %v862_v9 = vsub.f32 %v842_v54, %v860_v8 }
 0x51a   : > { %v863_v10 = vmul.f32 1.442695, %v862_v9 }
 0x51c   : > { %1577 = vpow2.f32 %v863_v10 }
 0x51d   : > { %1579 = vpow2.f32 %v855_v14 }
 0x526   : > { %v1578_v11 = vpop.eup %1577 }
 0x527   : > { %v867_v12 = vsel %vm849_vm3, %v1578_v11, 0.0  ;;  %v880_v13 = vpack.c.bf16 %v1578_v11, %v1578_v11  ;;  %v1580_v15 = vpop.eup %1579 }
 0x528   : > { %868 = vadd.xlane.f32.xlu0 %v867_v12  ;;  %v866_v18 = vmul.f32 %v1580_v15, %v865_v17 }
 0x529   : > { %1389 = vmatmul.mubr.msk.bf16.vlgmr.msra.gmra.mrb[8].mxu0 %vm849_vm3, %v880_v13 }
 0x53e   : > { %876 = vperm.xlu0 %1564, %v1580_v15  }
 0x5b5   : > { %v869_v19 = vpop.xlane.xlu0 %868 }
 0x5b6   : > { %v870_v20 = vadd.f32 %v869_v19, %v866_v18 }
 0x5b8   : > { %872 = vst.msk [vmem:[#allocation4] sm:$0xff] %vm565_vm4, %v870_v20 }
 0x5bd   : > { %v877_v25 = vpop.permute.xlu0 %876 }
 0x5be   : > { %v879_v26 = vmul.f32 %v877_v25, %v873_v24 }
 0x5bf   : > { %v936_v21 = vld [vmem:[#allocation4] sm:$0xff] }
 0x5c0   : > { %1581 = vrcp.f32 %v936_v21 }
 0x5ca   : > { %v1582_v22 = vpop.eup %1581 }
 0x5cb   : > { %940 = vperm.xlu1 %1563, %v1582_v22  }
 0x5fc   : > { %v923_v27 = vpop.f32.mrb[8].mxu0 }
 0x5fd   : > { %v929_v28 = vadd.f32 %v923_v27, %v879_v26  ;;  %v1390_v6 = vpop.f32.mrb[9].mxu0 }
 0x5fe   : > { %v926_v29 = vpop.f32.mrb[10].mxu0 }
 0x5ff   : > { %930 = vst.msk [vmem:[#allocation5] sm:$0xff] %vm568_vm2, %v929_v28  ;;  %v1391_v30 = vpop.f32.mrb[11].mxu0 }
 0x606   : > { %v935_v31 = vld [vmem:[#allocation5] sm:$0xff] }
 0x64a   : > { %v941_v32 = vpop.permute.xlu1 %940 }
 0x64b   : > { %v943_v33 = vmul.f32 %v941_v32, %v935_v31 }
 0x64d   : > { %v945_v34 = vpack.c.bf16 %v943_v33, %v943_v33 }
 0x64f   : > { %1397 = vmatmul.mubr.msk.bf16.vlgmr.msra.gmra.mrb[8].mxu1 %vm568_vm2, %v945_v34 }
 0x71f   : > { %1011 = sbr.rel (!%p1007_p8) target bundleno = 1838 (0x72e), region = 88 }
 0x722   : > { %v999_v36 = vpop.f32.mrb[8].mxu1 }
 0x723   : > { %v1005_v37 = vadd.f32 %v999_v36, %v944_v35  ;;  %v1398_v38 = vpop.f32.mrb[9].mxu1 }
 0x724   : > { %v1002_v39 = vpop.f32.mrb[10].mxu1 }
 0x725   : > { %1006 = vst.msk [vmem:[#allocation6] sm:$0xff] %vm568_vm2, %v1005_v37  ;;  %v1399_v40 = vpop.f32.mrb[11].mxu1 }
 0x72c   : > { %v1012_v41 = vld [vmem:[#allocation6] sm:$0xff] }
 0x72d   : > { %1013 = vst.msk [vmem:[%s541_s6] sm:$0xff] %vm568_vm2, %v1012_v41 }
 0x72e PF: > { %s2803_s18 = sld [smem:[#allocation34_spill]]  ;;  %s2804_s21 = sld [smem:[#allocation43_spill]] }
 0x72f   : > { %s2805_s9 = sld [smem:[#allocation51_spill]]  ;;  %s1033_s24 = sshll.u32 %s541_s6, 4  ;;  %s1034_s24 = int_to_ptr.vmem [resolvable:$true] %s1033_s24 }
 0x730   : > { %s1015_s20 = scalar_lea.sflag [#allocation9], %s2445_s14  ;;  %s1763_s29 = scalar_lea.vmem %s1034_s24, 128 }
 0x731   : > { %p1764_p5 = scmp.ne.s32.totalorder %s1034_s24, %s1763_s29  ;;  %s1972_s30 = smov [#allocation18]  }
 0x732   : > { %s1767_s15 = sshll.u32 %s1972_s30, 4  ;;  %s1768_s15 = int_to_ptr.vmem [resolvable:$false] %s1767_s15 }
 0x733   : > { %s1769_s3 = scalar_lea.vmem %s1768_s15, 256  ;;  %p1770_p7 = scmp.lt.s32.totalorder %s1034_s24, %s1768_s15 }
 0x734   : > { %s1329_s25 = sshll.u32 %s2803_s18, 7  ;;  %p2807_p10 = scmp.ne.s32.totalorder %s2804_s21, 0 }
 0x735   : > { %s2806_s23 = smov %s2805_s9  ;;  %s2593_s16 = scalar_lea.hbm %s2805_s9, %s1329_s25 }
 0x736   : > { %p1765_p6 = pnand %p1764_p5, %p2807_p10  ;;  %p1771_p12 = scmp.lt.s32.totalorder %s1769_s3, %s1763_s29 }
 0x738   : > { %p1766_p4 = pneg %p1765_p6  ;;  %p1772_p0 = por %p1771_p12, %p1770_p7 }
 0x73a   : > { %p1773_p2 = pnand %p1772_p0, %p1766_p4 }
 0x73c   : > { %1776 = shalt.err (!%p1773_p2)
}
 0x73d   : > { %s1777_s14 = scalar_lea.hbm %s2593_s16, 128  ;;  %s1781_s6 = scalar_lea.hbm %s2806_s23, 256 }
 0x73e   : > { %p1778_p11 = scmp.ne.s32.totalorder %s2593_s16, %s1777_s14  ;;  %p1782_p13 = scmp.lt.u32.totalorder %s2593_s16, %s2806_s23 }
 0x73f   : > { %p1783_p3 = scmp.lt.u32.totalorder %s1781_s6, %s1777_s14  ;;  %p1785_p5 = scmp.lt.u32.totalorder %s1777_s14, %s2593_s16 }
 0x740   : > { %p1779_p9 = pnand %p1778_p11, %p2807_p10 }
 0x741   : > { %p1784_p8 = por %p1783_p3, %p1782_p13 }
 0x742   : > { %p1780_p1 = pneg %p1779_p9 }
 0x743   : > { %p1786_p6 = por %p1785_p5, %p1784_p8 }
 0x745   : > { %p1787_p4 = pnand %p1786_p6, %p1780_p1 }
 0x747   : > { %1790 = shalt.err (!%p1787_p4)
}
 0x748   : > { %s2808_s28 = sld [smem:[#allocation33_spill]]  ;;  %s2810_s9 = sld [smem:[#allocation46_spill]] }
 0x749   : > { %1412 = dma.vmem_to_hbm [thread:$0]  (%p2807_p10), %s1034_s24, 128, %s2593_s16, %s1015_s20  }
 0x74a   : > { %s1330_s29 = sshll.u32 %s2803_s18, 1  ;;  %s1049_s30 = sshll.u32 %s548_s19, 4  ;;  %s2619_s30 = int_to_ptr.vmem [resolvable:$true] %s1049_s30 }
 0x74b   : > { %s2811_s21 = sld [smem:[#allocation52_spill]]  ;;  %s1020_s6 = scalar_lea.sflag [#allocation20], %s546_s7 }
 0x74c   : > { %s1791_s27 = scalar_lea.vmem %s2619_s30, 128  ;;  %s1973_s26 = smov [#allocation19]  }
 0x74d   : > { %p1792_p7 = scmp.ne.s32.totalorder %s2619_s30, %s1791_s27  ;;  %s1795_s19 = sshll.u32 %s1973_s26, 4  ;;  %s1796_s19 = int_to_ptr.vmem [resolvable:$false] %s1795_s19 }
 0x74e   : > { %s1045_s15 = sadd.s32 %s2808_s28, %s1330_s29  ;;  %p2812_p12 = scmp.ne.s32.totalorder %s2810_s9, 0 }
 0x74f   : > { %s1331_s3 = sshll.u32 %s1045_s15, 7  ;;  %s1797_s18 = scalar_lea.vmem %s1796_s19, 256 }
 0x750   : > { %p1793_p10 = pnand %p1792_p7, %p2812_p12  ;;  %p1798_p2 = scmp.lt.s32.totalorder %s2619_s30, %s1796_s19 }
 0x751   : > { %s1047_s1 = scalar_lea.hbm %s2811_s21, %s1331_s3  ;;  %p1799_p11 = scmp.lt.s32.totalorder %s1797_s18, %s1791_s27 }
 0x752   : > { %p1794_p0 = pneg %p1793_p10 }
 0x753   : > { %p1800_p9 = por %p1799_p11, %p1798_p2 }
 0x755   : > { %p1801_p1 = pnand %p1800_p9, %p1794_p0 }
 0x757   : > { %1804 = shalt.err (!%p1801_p1)
}
 0x758   : > { %s1805_s16 = scalar_lea.hbm %s1047_s1, 128  ;;  %s1809_s20 = scalar_lea.hbm %s2811_s21, 512 }
 0x759   : > { %p1806_p13 = scmp.ne.s32.totalorder %s1047_s1, %s1805_s16  ;;  %p1810_p5 = scmp.lt.u32.totalorder %s1047_s1, %s2811_s21 }
 0x75a   : > { %p1811_p6 = scmp.lt.u32.totalorder %s1809_s20, %s1805_s16  ;;  %p1813_p7 = scmp.lt.u32.totalorder %s1805_s16, %s1047_s1 }
 0x75b   : > { %p1807_p3 = pnand %p1806_p13, %p2812_p12 }
 0x75c   : > { %p1812_p4 = por %p1811_p6, %p1810_p5 }
 0x75d   : > { %p1808_p8 = pneg %p1807_p3 }
 0x75e   : > { %p1814_p10 = por %p1813_p7, %p1812_p4 }
 0x760   : > { %p1815_p0 = pnand %p1814_p10, %p1808_p8 }
 0x762   : > { %1818 = shalt.err (!%p1815_p0)
}
 0x763   : > { %1413 = dma.vmem_to_hbm [thread:$0]  (%p2812_p12), %s2619_s30, 128, %s1047_s1, %s1020_s6  }
 0x764 PF: > { %s2813_s8 = sld [smem:[#allocation36_spill]]  ;;  %s2814_s29 = sld [smem:[#allocation32_spill]] }
 0x765   : > { %s2815_s15 = sld [smem:[#allocation44_spill]] }
 0x76a   : > { %p1443_p2 = scmp.ge.s32.totalorder %s2813_s8, 2  ;;  %s1061_s3 = sand.u32 1, %s2814_s29  }
 0x76b   : > { %p2816_p11 = scmp.ne.s32.totalorder %s2815_s15, 0  ;;  %s1062_s14 = scalar_lea.sflag [#allocation9], %s1061_s3 }
 0x76d   : > { %p1436_p9 = pnand %p1443_p2, %p2816_p11 }
 0x76f   : > { %1896 = dma.done.wait (!%p1436_p9), %s1062_s14, 128  }
 0x770   : > { %1898 = vsyncadd (!%p1436_p9), %s1062_s14, 4294967168  ;;  %s2817_s11 = sld [smem:[#allocation28_spill]]  ;;  %s2818_s27 = sld [smem:[#allocation47_spill]] }
 0x776   : > { %s1070_s26 = sand.u32 1, %s2817_s11   ;;  %p2819_p1 = scmp.ne.s32.totalorder %s2818_s27, 0 }
 0x777   : > { %s1071_s19 = scalar_lea.sflag [#allocation20], %s1070_s26 }
 0x778   : > { %p1439_p13 = pnand %p1443_p2, %p2819_p1 }
 0x77a   : > { %1900 = dma.done.wait (!%p1439_p13), %s1071_s19, 128  }
 0x77b   : > { %1902 = vsyncadd (!%p1439_p13), %s1071_s19, 4294967168  ;;  %s37_s18 = sadd.s32 1, %s2813_s8   ;;  %s2821_s27 = sld [smem:[#allocation29_spill]] }
 0x77c   : > { %p2650_p12 = scmp.ge.s32.totalorder %s37_s18, 6   ;;  %s2822_s28 = sld [smem:[#allocation30_spill]] }
 0x77d   : > { %s2823_s29 = sld [smem:[#allocation45_spill]]  ;;  %s2824_s30 = sld [smem:[#allocation31_spill]] }
 0x77e   : > { %s2825_s1 = sld [smem:[#allocation40_spill]]  ;;  %s2826_s6 = sld [smem:[#allocation41_spill]] }
 0x77f   : > { %s2827_s14 = sld [smem:[#allocation35_spill]]  ;;  %s2828_s16 = sld [smem:[#allocation38_spill]] }
 0x780   : > { %s2829_s7 = sld [smem:[#allocation39_spill]]  ;;  %s2831_s9 = smov %s1925_s10 }
 0x781   : > { %s2833_s11 = smov %s1933_s12  ;;  %s2834_s12 = smov %s1937_s13 }
 0x782   : > { %s2836_s15 = smov %s1953_s17  ;;  %36 = sbr.rel (!%p2650_p12) target bundleno = 24 (0x18), region = 187 }
 0x784   : > { %s2832_s10 = smov %s2825_s1  ;;  %s2835_s13 = smov %s2826_s6 }
 0x786   : > { %s2837_s17 = smov %s2829_s7 }
 0x789   :  { %1076 = vsyncpa [#allocation8], 1 }
 0x78a   :  { %1078 = vsyncpa [#allocation8 + $0x1], 1 }
 0x78b   :  { %1079 = vsyncpa [#allocation11], 1 }
 0x78c   :  { %1081 = vsyncpa [#allocation11 + $0x1], 1 }
 0x78d   :  { %1082 = vsyncpa [#allocation14], 1 }
 0x78e   :  { %1084 = vsyncpa [#allocation14 + $0x1], 1 }
 0x78f   :  { %1085 = vsyncpa [#allocation17], 1 }
 0x790   :  { %1087 = vsyncpa [#allocation17 + $0x1], 1 }
 0x791   :  { %1088 = vsyncpa [#allocation9], 1 }
 0x792   :  { %1090 = vsyncpa [#allocation9 + $0x1], 1 }
 0x793   :  { %1091 = vsyncpa [#allocation20], 1 }
 0x794   :  { %1093 = vsyncpa [#allocation20 + $0x1], 1 }

</bundles_post_ra>
